<compile_context>
chip_gen: v7x
topology: tpu7x:2x2x1
jax: 0.10.0
libtpu: 0.0.40
codegen_flags: <defaults>
</compile_context>

<pallas_src>
from functools import partial

import numpy as np

import jax
import jax.numpy as jnp
from jax.experimental import pallas as pl
from jax.experimental.pallas import tpu as pltpu


def crop_roi_kernel(bidx_ref, sd_ref, ed_ref, f_ref, m_ref, out_ref, *, out_d):
    """One grid step == one proposal.

    f_ref   : (C, Df, Hf*Wf) lane-dense feature block of this proposal's batch (VMEM)
    m_ref   : (1, out_h*out_w, Hf*Wf) additive (0 / -inf) H*W window masks (VMEM)
    out_ref : (1, C, out_d*out_h*out_w) pooled crop (VMEM)
    sd/ed   : flat (N*out_d,) int32 depth-window bounds (SMEM scalar prefetch)
    """
    i = pl.program_id(0)
    C, Df, HW = f_ref.shape
    cells_hw = m_ref.shape[1]
    neg = jnp.float32(-jnp.inf)
    base = i * out_d

    # ---- depth stage: one pass over Df, each slice loaded once and folded into
    # ---- every depth-window accumulator with a scalar predicate (pure VPU work).
    slabs = [jnp.full((C, HW), neg, dtype=jnp.float32) for _ in range(out_d)]
    for z in range(Df):
        fz = f_ref[:, z, :].astype(jnp.float32)                 # (C, HW) lane-dense
        for od in range(out_d):
            hit = jnp.logical_and(z >= sd_ref[base + od], z < ed_ref[base + od])
            slabs[od] = jnp.maximum(slabs[od], jnp.where(hit, fz, neg))

    # ---- H/W stage: additive -inf masks + lane-reduce max per output cell; rows
    # ---- are assembled with concatenate and stored with static slices.
    for od in range(out_d):
        cols = []
        for cell in range(cells_hw):
            m_row = m_ref[0, cell:cell + 1, :]                  # (1, HW)
            v = jnp.max(slabs[od] + m_row, axis=-1, keepdims=True)   # (C, 1)
            cols.append(v)
        row = jnp.concatenate(cols, axis=1)                     # (C, cells_hw)
        out_ref[0, :, od * cells_hw:(od + 1) * cells_hw] = row.astype(out_ref.dtype)


@partial(jax.jit, static_argnames=("stride", "rcnn_crop_size"))
def crop_roi_forward(f, inputs, proposals, *, stride, rcnn_crop_size):
    """f: (B, C, Df, Hf, Wf), inputs: (B, 1, D, H, W) (shape only),
    proposals: (N, 8) = [b, score, z, y, x, dz, dy, dx].
    Returns crops: (N, C, od, oh, ow)."""
    B, C, Df, Hf, Wf = f.shape
    N = proposals.shape[0]
    out_d, out_h, out_w = rcnn_crop_size
    cells_hw = out_h * out_w
    cells = out_d * cells_hw
    HW = Hf * Wf

    D, H, W = inputs.shape[2:]
    maxdims = jnp.array([D // stride, H // stride, W // stride], jnp.int32)

    # --- proposal box -> clamped feature-space bounds (PyTorch formula) -------
    center = proposals[:, 2:5]
    side = proposals[:, 5:8]
    c0 = jnp.floor((center - side * 0.5) / stride).astype(jnp.int32)
    c1 = jnp.ceil((center + side * 0.5) / stride).astype(jnp.int32)
    c0 = jnp.clip(c0, 0, maxdims[None, :] - 1)
    c1 = jnp.clip(c1, 1, maxdims[None, :])
    # Guard degenerate / fully clipped boxes: PyTorch would error on an empty crop;
    # we clamp the window length to >= 1 so valid boxes are untouched and clipped
    # boxes pool a single in-bounds voxel instead of emitting -inf.
    L = jnp.maximum(c1 - c0, 1)

    # --- adaptive_max_pool3d window bounds per output index -------------------
    def bounds(axis, out):
        j = jnp.arange(out, dtype=jnp.int32)[None, :]
        base = c0[:, axis:axis + 1]
        length = L[:, axis:axis + 1]
        start = base + (j * length) // out
        end = base + ((j + 1) * length + out - 1) // out            # ceil div
        return start.astype(jnp.int32), end.astype(jnp.int32)

    sd, ed = bounds(0, out_d)                                        # (N, out_d)
    sh, eh = bounds(1, out_h)                                        # (N, out_h)
    sw, ew = bounds(2, out_w)                                        # (N, out_w)
    bidx = proposals[:, 0].astype(jnp.int32)

    # --- combined additive (0 / -inf) H*W window masks per proposal & cell ----
    h_iota = jnp.arange(Hf, dtype=jnp.int32)
    w_iota = jnp.arange(Wf, dtype=jnp.int32)
    mh = (h_iota[None, None, :] >= sh[:, :, None]) & (h_iota[None, None, :] < eh[:, :, None])
    mw = (w_iota[None, None, :] >= sw[:, :, None]) & (w_iota[None, None, :] < ew[:, :, None])
    mhw = mh[:, :, None, :, None] & mw[:, None, :, None, :]          # (N,oh,ow,Hf,Wf)
    hw_mask = jnp.where(mhw, 0.0, -jnp.inf).astype(jnp.float32).reshape(N, cells_hw, HW)

    # --- sort proposals by batch so consecutive grid steps reuse the feature ---
    # --- block (Pallas skips the re-DMA when the block index is unchanged) -----
    order = jnp.argsort(bidx)
    inv_order = jnp.argsort(order)
    bidx_s = bidx[order]
    sd_s = sd[order].reshape(-1)                                     # flat 1-D SMEM
    ed_s = ed[order].reshape(-1)
    hw_mask_s = hw_mask[order]

    # Lane-dense layout, native dtype: (B*C, Df, Hf*Wf); pure metadata reshape.
    f4 = f.reshape(B * C, Df, HW)

    itemsize = jnp.dtype(f.dtype).itemsize
    fblock = C * Df * HW * itemsize
    mblock = cells_hw * HW * 4
    oblock = C * cells * itemsize
    vmem_limit = int(max(2 * (fblock + mblock + oblock) + (4 << 20), 32 * 1024 * 1024))

    cost = pl.CostEstimate(
        flops=2 * N * C * HW * (out_d * Df + cells),
        transcendentals=0,
        bytes_accessed=B * C * Df * HW * itemsize + N * (mblock + oblock),
    )

    out_sorted = pl.pallas_call(
        partial(crop_roi_kernel, out_d=out_d),
        out_shape=jax.ShapeDtypeStruct((N, C, cells), f.dtype),
        grid_spec=pltpu.PrefetchScalarGridSpec(
            num_scalar_prefetch=3,                   # bidx, sd, ed (flat int32, SMEM)
            grid=(N,),
            in_specs=[
                # Only the proposal's batch feature block is DMA'd per step; the
                # data-dependent index comes from the prefetched batch indices.
                pl.BlockSpec((C, Df, HW), lambda i, b, *_: (b[i], 0, 0)),
                # Per-proposal H*W additive masks (small).
                pl.BlockSpec((1, cells_hw, HW), lambda i, *_: (i, 0, 0)),
            ],
            out_specs=pl.BlockSpec((1, C, cells), lambda i, *_: (i, 0, 0)),
        ),
        compiler_params=pltpu.CompilerParams(
            dimension_semantics=("parallel",),
            vmem_limit_bytes=vmem_limit,
        ),
        cost_estimate=cost,
    )(bidx_s, sd_s, ed_s, f4, hw_mask_s)

    out = out_sorted[inv_order]                      # undo the batch sort
    return out.reshape(N, C, out_d, out_h, out_w)


# ----------------------------- numpy reference ------------------------------ #

def _adaptive_max_pool3d_np(x, out_size):
    C, d, h, w = x.shape
    od, oh, ow = out_size
    out = np.empty((C, od, oh, ow), x.dtype)
    for i in range(od):
        ds, de = (i * d) // od, -((-(i + 1) * d) // od)
        for j in range(oh):
            hs, he = (j * h) // oh, -((-(j + 1) * h) // oh)
            for k in range(ow):
                ws, we = (k * w) // ow, -((-(k + 1) * w) // ow)
                out[:, i, j, k] = x[:, ds:de, hs:he, ws:we].max(axis=(1, 2, 3))
    return out


def reference_crop_roi(f, inputs_shape, proposals, stride, crop_size):
    D, H, W = inputs_shape[2:]
    maxdims = np.array([D // stride, H // stride, W // stride], np.int64)
    crops = []
    for p in proposals:
        b = int(p[0])
        center = p[2:5]
        side = p[5:8]
        c0 = np.floor((center - side * 0.5) / stride).astype(np.int64)
        c1 = np.ceil((center + side * 0.5) / stride).astype(np.int64)
        c0 = np.maximum(c0, 0)
        c1 = np.minimum(c1, maxdims)
        crop = f[b, :, c0[0]:c1[0], c0[1]:c1[1], c0[2]:c1[2]]
        crops.append(_adaptive_max_pool3d_np(crop, crop_size))
    return np.stack(crops)


if __name__ == "__main__":
    # Small shapes consistent with the module: stride-4 feature map of a 32^3 input.
    B, C = 2, 16
    stride = 4
    Df = Hf = Wf = 8
    D = H = W = Df * stride            # 32
    N = 4                              # proposals (>= 2 grid steps for v7x megacore)
    rcnn_crop_size = (2, 2, 2)

    key = jax.random.PRNGKey(0)
    kf, kb, kc, ks = jax.random.split(key, 4)
    f = jax.random.normal(kf, (B, C, Df, Hf, Wf), dtype=jnp.float32)
    inputs = jnp.zeros((B, 1, D, H, W), dtype=jnp.float32)
    b_idx = jax.random.randint(kb, (N,), 0, B)
    centers = jax.random.uniform(kc, (N, 3), jnp.float32, 10.0, 22.0)
    sides = jax.random.uniform(ks, (N, 3), jnp.float32, 8.0, 18.0)
    proposals = jnp.concatenate(
        [b_idx[:, None].astype(jnp.float32),
         jnp.ones((N, 1), jnp.float32),
         centers, sides], axis=1)                      # (N, 8)

    crops = crop_roi_forward(f, inputs, proposals,
                             stride=stride, rcnn_crop_size=rcnn_crop_size)
    crops = jax.block_until_ready(crops)

    ref = reference_crop_roi(np.asarray(f), inputs.shape, np.asarray(proposals),
                             stride, rcnn_crop_size)
    assert crops.shape == (N, C, *rcnn_crop_size)
    assert np.allclose(np.asarray(crops), ref, atol=1e-5, rtol=1e-5)

    print("KERNEL_OK")
</pallas_src>

<mosaic_0001>
module attributes {stable_mosaic.version = 11 : i64} {
  func.func @crop_roi_kernel(%arg0: i32, %arg1: memref<4xi32, #tpu.memory_space<smem>>, %arg2: memref<8xi32, #tpu.memory_space<smem>>, %arg3: memref<8xi32, #tpu.memory_space<smem>>, %arg4: memref<16x8x64xf32, #tpu.memory_space<vmem>>, %arg5: memref<1x4x64xf32, #tpu.memory_space<vmem>>, %arg6: memref<1x16x8xf32, #tpu.memory_space<vmem>>) attributes {dimension_semantics = [#tpu.dimension_semantics<parallel>], iteration_bounds = array<i64: 4>, scalar_prefetch = 3 : i64, scratch_operands = 0 : i64, tpu.core_type = #tpu.core_type<tc>, window_params = [{transform_indices = @transform_0, window_bounds = array<i64: 16, 8, 64>}, {transform_indices = @transform_1, window_bounds = array<i64: 1, 4, 64>}, {transform_indices = @transform_2, window_bounds = array<i64: 1, 16, 8>}]} {
    %c2_i32 = arith.constant 2 : i32
    %0 = arith.muli %arg0, %c2_i32 : i32
    %cst = arith.constant 0xFF800000 : f32
    %1 = vector.broadcast %cst : f32 to vector<16x64xf32>
    %cst_0 = arith.constant 0xFF800000 : f32
    %2 = vector.broadcast %cst_0 : f32 to vector<16x64xf32>
    %c0 = arith.constant 0 : index
    %c0_1 = arith.constant 0 : index
    %c0_2 = arith.constant 0 : index
    %3 = vector.load %arg4[%c0, %c0_1, %c0_2] : memref<16x8x64xf32, #tpu.memory_space<vmem>>, vector<16x1x64xf32>
    %4 = vector.shape_cast %3 : vector<16x1x64xf32> to vector<16x64xf32>
    %c0_i32 = arith.constant 0 : i32
    %5 = arith.addi %0, %c0_i32 : i32
    %6 = arith.index_cast %5 : i32 to index
    %7 = memref.load %arg2[%6] : memref<8xi32, #tpu.memory_space<smem>>
    %c0_i32_3 = arith.constant 0 : i32
    %8 = arith.cmpi sle, %7, %c0_i32_3 : i32
    %c0_i32_4 = arith.constant 0 : i32
    %9 = arith.addi %0, %c0_i32_4 : i32
    %10 = arith.index_cast %9 : i32 to index
    %11 = memref.load %arg3[%10] : memref<8xi32, #tpu.memory_space<smem>>
    %c0_i32_5 = arith.constant 0 : i32
    %12 = arith.cmpi sgt, %11, %c0_i32_5 : i32
    %13 = arith.andi %8, %12 : i1
    %cst_6 = arith.constant 0xFF800000 : f32
    %14 = vector.broadcast %cst_6 : f32 to vector<16x64xf32>
    %15 = arith.select %13, %4, %14 : vector<16x64xf32>
    %16 = arith.maximumf %1, %15 : vector<16x64xf32>
    %c1_i32 = arith.constant 1 : i32
    %17 = arith.addi %0, %c1_i32 : i32
    %18 = arith.index_cast %17 : i32 to index
    %19 = memref.load %arg2[%18] : memref<8xi32, #tpu.memory_space<smem>>
    %c0_i32_7 = arith.constant 0 : i32
    %20 = arith.cmpi sle, %19, %c0_i32_7 : i32
    %c1_i32_8 = arith.constant 1 : i32
    %21 = arith.addi %0, %c1_i32_8 : i32
    %22 = arith.index_cast %21 : i32 to index
    %23 = memref.load %arg3[%22] : memref<8xi32, #tpu.memory_space<smem>>
    %c0_i32_9 = arith.constant 0 : i32
    %24 = arith.cmpi sgt, %23, %c0_i32_9 : i32
    %25 = arith.andi %20, %24 : i1
    %cst_10 = arith.constant 0xFF800000 : f32
    %26 = vector.broadcast %cst_10 : f32 to vector<16x64xf32>
    %27 = arith.select %25, %4, %26 : vector<16x64xf32>
    %28 = arith.maximumf %2, %27 : vector<16x64xf32>
    %c0_11 = arith.constant 0 : index
    %c1 = arith.constant 1 : index
    %c0_12 = arith.constant 0 : index
    %29 = vector.load %arg4[%c0_11, %c1, %c0_12] : memref<16x8x64xf32, #tpu.memory_space<vmem>>, vector<16x1x64xf32>
    %30 = vector.shape_cast %29 : vector<16x1x64xf32> to vector<16x64xf32>
    %c0_i32_13 = arith.constant 0 : i32
    %31 = arith.addi %0, %c0_i32_13 : i32
    %32 = arith.index_cast %31 : i32 to index
    %33 = memref.load %arg2[%32] : memref<8xi32, #tpu.memory_space<smem>>
    %c1_i32_14 = arith.constant 1 : i32
    %34 = arith.cmpi sle, %33, %c1_i32_14 : i32
    %c0_i32_15 = arith.constant 0 : i32
    %35 = arith.addi %0, %c0_i32_15 : i32
    %36 = arith.index_cast %35 : i32 to index
    %37 = memref.load %arg3[%36] : memref<8xi32, #tpu.memory_space<smem>>
    %c1_i32_16 = arith.constant 1 : i32
    %38 = arith.cmpi sgt, %37, %c1_i32_16 : i32
    %39 = arith.andi %34, %38 : i1
    %cst_17 = arith.constant 0xFF800000 : f32
    %40 = vector.broadcast %cst_17 : f32 to vector<16x64xf32>
    %41 = arith.select %39, %30, %40 : vector<16x64xf32>
    %42 = arith.maximumf %16, %41 : vector<16x64xf32>
    %c1_i32_18 = arith.constant 1 : i32
    %43 = arith.addi %0, %c1_i32_18 : i32
    %44 = arith.index_cast %43 : i32 to index
    %45 = memref.load %arg2[%44] : memref<8xi32, #tpu.memory_space<smem>>
    %c1_i32_19 = arith.constant 1 : i32
    %46 = arith.cmpi sle, %45, %c1_i32_19 : i32
    %c1_i32_20 = arith.constant 1 : i32
    %47 = arith.addi %0, %c1_i32_20 : i32
    %48 = arith.index_cast %47 : i32 to index
    %49 = memref.load %arg3[%48] : memref<8xi32, #tpu.memory_space<smem>>
    %c1_i32_21 = arith.constant 1 : i32
    %50 = arith.cmpi sgt, %49, %c1_i32_21 : i32
    %51 = arith.andi %46, %50 : i1
    %cst_22 = arith.constant 0xFF800000 : f32
    %52 = vector.broadcast %cst_22 : f32 to vector<16x64xf32>
    %53 = arith.select %51, %30, %52 : vector<16x64xf32>
    %54 = arith.maximumf %28, %53 : vector<16x64xf32>
    %c0_23 = arith.constant 0 : index
    %c2 = arith.constant 2 : index
    %c0_24 = arith.constant 0 : index
    %55 = vector.load %arg4[%c0_23, %c2, %c0_24] : memref<16x8x64xf32, #tpu.memory_space<vmem>>, vector<16x1x64xf32>
    %56 = vector.shape_cast %55 : vector<16x1x64xf32> to vector<16x64xf32>
    %c0_i32_25 = arith.constant 0 : i32
    %57 = arith.addi %0, %c0_i32_25 : i32
    %58 = arith.index_cast %57 : i32 to index
    %59 = memref.load %arg2[%58] : memref<8xi32, #tpu.memory_space<smem>>
    %c2_i32_26 = arith.constant 2 : i32
    %60 = arith.cmpi sle, %59, %c2_i32_26 : i32
    %c0_i32_27 = arith.constant 0 : i32
    %61 = arith.addi %0, %c0_i32_27 : i32
    %62 = arith.index_cast %61 : i32 to index
    %63 = memref.load %arg3[%62] : memref<8xi32, #tpu.memory_space<smem>>
    %c2_i32_28 = arith.constant 2 : i32
    %64 = arith.cmpi sgt, %63, %c2_i32_28 : i32
    %65 = arith.andi %60, %64 : i1
    %cst_29 = arith.constant 0xFF800000 : f32
    %66 = vector.broadcast %cst_29 : f32 to vector<16x64xf32>
    %67 = arith.select %65, %56, %66 : vector<16x64xf32>
    %68 = arith.maximumf %42, %67 : vector<16x64xf32>
    %c1_i32_30 = arith.constant 1 : i32
    %69 = arith.addi %0, %c1_i32_30 : i32
    %70 = arith.index_cast %69 : i32 to index
    %71 = memref.load %arg2[%70] : memref<8xi32, #tpu.memory_space<smem>>
    %c2_i32_31 = arith.constant 2 : i32
    %72 = arith.cmpi sle, %71, %c2_i32_31 : i32
    %c1_i32_32 = arith.constant 1 : i32
    %73 = arith.addi %0, %c1_i32_32 : i32
    %74 = arith.index_cast %73 : i32 to index
    %75 = memref.load %arg3[%74] : memref<8xi32, #tpu.memory_space<smem>>
    %c2_i32_33 = arith.constant 2 : i32
    %76 = arith.cmpi sgt, %75, %c2_i32_33 : i32
    %77 = arith.andi %72, %76 : i1
    %cst_34 = arith.constant 0xFF800000 : f32
    %78 = vector.broadcast %cst_34 : f32 to vector<16x64xf32>
    %79 = arith.select %77, %56, %78 : vector<16x64xf32>
    %80 = arith.maximumf %54, %79 : vector<16x64xf32>
    %c0_35 = arith.constant 0 : index
    %c3 = arith.constant 3 : index
    %c0_36 = arith.constant 0 : index
    %81 = vector.load %arg4[%c0_35, %c3, %c0_36] : memref<16x8x64xf32, #tpu.memory_space<vmem>>, vector<16x1x64xf32>
    %82 = vector.shape_cast %81 : vector<16x1x64xf32> to vector<16x64xf32>
    %c0_i32_37 = arith.constant 0 : i32
    %83 = arith.addi %0, %c0_i32_37 : i32
    %84 = arith.index_cast %83 : i32 to index
    %85 = memref.load %arg2[%84] : memref<8xi32, #tpu.memory_space<smem>>
    %c3_i32 = arith.constant 3 : i32
    %86 = arith.cmpi sle, %85, %c3_i32 : i32
    %c0_i32_38 = arith.constant 0 : i32
    %87 = arith.addi %0, %c0_i32_38 : i32
    %88 = arith.index_cast %87 : i32 to index
    %89 = memref.load %arg3[%88] : memref<8xi32, #tpu.memory_space<smem>>
    %c3_i32_39 = arith.constant 3 : i32
    %90 = arith.cmpi sgt, %89, %c3_i32_39 : i32
    %91 = arith.andi %86, %90 : i1
    %cst_40 = arith.constant 0xFF800000 : f32
    %92 = vector.broadcast %cst_40 : f32 to vector<16x64xf32>
    %93 = arith.select %91, %82, %92 : vector<16x64xf32>
    %94 = arith.maximumf %68, %93 : vector<16x64xf32>
    %c1_i32_41 = arith.constant 1 : i32
    %95 = arith.addi %0, %c1_i32_41 : i32
    %96 = arith.index_cast %95 : i32 to index
    %97 = memref.load %arg2[%96] : memref<8xi32, #tpu.memory_space<smem>>
    %c3_i32_42 = arith.constant 3 : i32
    %98 = arith.cmpi sle, %97, %c3_i32_42 : i32
    %c1_i32_43 = arith.constant 1 : i32
    %99 = arith.addi %0, %c1_i32_43 : i32
    %100 = arith.index_cast %99 : i32 to index
    %101 = memref.load %arg3[%100] : memref<8xi32, #tpu.memory_space<smem>>
    %c3_i32_44 = arith.constant 3 : i32
    %102 = arith.cmpi sgt, %101, %c3_i32_44 : i32
    %103 = arith.andi %98, %102 : i1
    %cst_45 = arith.constant 0xFF800000 : f32
    %104 = vector.broadcast %cst_45 : f32 to vector<16x64xf32>
    %105 = arith.select %103, %82, %104 : vector<16x64xf32>
    %106 = arith.maximumf %80, %105 : vector<16x64xf32>
    %c0_46 = arith.constant 0 : index
    %c4 = arith.constant 4 : index
    %c0_47 = arith.constant 0 : index
    %107 = vector.load %arg4[%c0_46, %c4, %c0_47] : memref<16x8x64xf32, #tpu.memory_space<vmem>>, vector<16x1x64xf32>
    %108 = vector.shape_cast %107 : vector<16x1x64xf32> to vector<16x64xf32>
    %c0_i32_48 = arith.constant 0 : i32
    %109 = arith.addi %0, %c0_i32_48 : i32
    %110 = arith.index_cast %109 : i32 to index
    %111 = memref.load %arg2[%110] : memref<8xi32, #tpu.memory_space<smem>>
    %c4_i32 = arith.constant 4 : i32
    %112 = arith.cmpi sle, %111, %c4_i32 : i32
    %c0_i32_49 = arith.constant 0 : i32
    %113 = arith.addi %0, %c0_i32_49 : i32
    %114 = arith.index_cast %113 : i32 to index
    %115 = memref.load %arg3[%114] : memref<8xi32, #tpu.memory_space<smem>>
    %c4_i32_50 = arith.constant 4 : i32
    %116 = arith.cmpi sgt, %115, %c4_i32_50 : i32
    %117 = arith.andi %112, %116 : i1
    %cst_51 = arith.constant 0xFF800000 : f32
    %118 = vector.broadcast %cst_51 : f32 to vector<16x64xf32>
    %119 = arith.select %117, %108, %118 : vector<16x64xf32>
    %120 = arith.maximumf %94, %119 : vector<16x64xf32>
    %c1_i32_52 = arith.constant 1 : i32
    %121 = arith.addi %0, %c1_i32_52 : i32
    %122 = arith.index_cast %121 : i32 to index
    %123 = memref.load %arg2[%122] : memref<8xi32, #tpu.memory_space<smem>>
    %c4_i32_53 = arith.constant 4 : i32
    %124 = arith.cmpi sle, %123, %c4_i32_53 : i32
    %c1_i32_54 = arith.constant 1 : i32
    %125 = arith.addi %0, %c1_i32_54 : i32
    %126 = arith.index_cast %125 : i32 to index
    %127 = memref.load %arg3[%126] : memref<8xi32, #tpu.memory_space<smem>>
    %c4_i32_55 = arith.constant 4 : i32
    %128 = arith.cmpi sgt, %127, %c4_i32_55 : i32
    %129 = arith.andi %124, %128 : i1
    %cst_56 = arith.constant 0xFF800000 : f32
    %130 = vector.broadcast %cst_56 : f32 to vector<16x64xf32>
    %131 = arith.select %129, %108, %130 : vector<16x64xf32>
    %132 = arith.maximumf %106, %131 : vector<16x64xf32>
    %c0_57 = arith.constant 0 : index
    %c5 = arith.constant 5 : index
    %c0_58 = arith.constant 0 : index
    %133 = vector.load %arg4[%c0_57, %c5, %c0_58] : memref<16x8x64xf32, #tpu.memory_space<vmem>>, vector<16x1x64xf32>
    %134 = vector.shape_cast %133 : vector<16x1x64xf32> to vector<16x64xf32>
    %c0_i32_59 = arith.constant 0 : i32
    %135 = arith.addi %0, %c0_i32_59 : i32
    %136 = arith.index_cast %135 : i32 to index
    %137 = memref.load %arg2[%136] : memref<8xi32, #tpu.memory_space<smem>>
    %c5_i32 = arith.constant 5 : i32
    %138 = arith.cmpi sle, %137, %c5_i32 : i32
    %c0_i32_60 = arith.constant 0 : i32
    %139 = arith.addi %0, %c0_i32_60 : i32
    %140 = arith.index_cast %139 : i32 to index
    %141 = memref.load %arg3[%140] : memref<8xi32, #tpu.memory_space<smem>>
    %c5_i32_61 = arith.constant 5 : i32
    %142 = arith.cmpi sgt, %141, %c5_i32_61 : i32
    %143 = arith.andi %138, %142 : i1
    %cst_62 = arith.constant 0xFF800000 : f32
    %144 = vector.broadcast %cst_62 : f32 to vector<16x64xf32>
    %145 = arith.select %143, %134, %144 : vector<16x64xf32>
    %146 = arith.maximumf %120, %145 : vector<16x64xf32>
    %c1_i32_63 = arith.constant 1 : i32
    %147 = arith.addi %0, %c1_i32_63 : i32
    %148 = arith.index_cast %147 : i32 to index
    %149 = memref.load %arg2[%148] : memref<8xi32, #tpu.memory_space<smem>>
    %c5_i32_64 = arith.constant 5 : i32
    %150 = arith.cmpi sle, %149, %c5_i32_64 : i32
    %c1_i32_65 = arith.constant 1 : i32
    %151 = arith.addi %0, %c1_i32_65 : i32
    %152 = arith.index_cast %151 : i32 to index
    %153 = memref.load %arg3[%152] : memref<8xi32, #tpu.memory_space<smem>>
    %c5_i32_66 = arith.constant 5 : i32
    %154 = arith.cmpi sgt, %153, %c5_i32_66 : i32
    %155 = arith.andi %150, %154 : i1
    %cst_67 = arith.constant 0xFF800000 : f32
    %156 = vector.broadcast %cst_67 : f32 to vector<16x64xf32>
    %157 = arith.select %155, %134, %156 : vector<16x64xf32>
    %158 = arith.maximumf %132, %157 : vector<16x64xf32>
    %c0_68 = arith.constant 0 : index
    %c6 = arith.constant 6 : index
    %c0_69 = arith.constant 0 : index
    %159 = vector.load %arg4[%c0_68, %c6, %c0_69] : memref<16x8x64xf32, #tpu.memory_space<vmem>>, vector<16x1x64xf32>
    %160 = vector.shape_cast %159 : vector<16x1x64xf32> to vector<16x64xf32>
    %c0_i32_70 = arith.constant 0 : i32
    %161 = arith.addi %0, %c0_i32_70 : i32
    %162 = arith.index_cast %161 : i32 to index
    %163 = memref.load %arg2[%162] : memref<8xi32, #tpu.memory_space<smem>>
    %c6_i32 = arith.constant 6 : i32
    %164 = arith.cmpi sle, %163, %c6_i32 : i32
    %c0_i32_71 = arith.constant 0 : i32
    %165 = arith.addi %0, %c0_i32_71 : i32
    %166 = arith.index_cast %165 : i32 to index
    %167 = memref.load %arg3[%166] : memref<8xi32, #tpu.memory_space<smem>>
    %c6_i32_72 = arith.constant 6 : i32
    %168 = arith.cmpi sgt, %167, %c6_i32_72 : i32
    %169 = arith.andi %164, %168 : i1
    %cst_73 = arith.constant 0xFF800000 : f32
    %170 = vector.broadcast %cst_73 : f32 to vector<16x64xf32>
    %171 = arith.select %169, %160, %170 : vector<16x64xf32>
    %172 = arith.maximumf %146, %171 : vector<16x64xf32>
    %c1_i32_74 = arith.constant 1 : i32
    %173 = arith.addi %0, %c1_i32_74 : i32
    %174 = arith.index_cast %173 : i32 to index
    %175 = memref.load %arg2[%174] : memref<8xi32, #tpu.memory_space<smem>>
    %c6_i32_75 = arith.constant 6 : i32
    %176 = arith.cmpi sle, %175, %c6_i32_75 : i32
    %c1_i32_76 = arith.constant 1 : i32
    %177 = arith.addi %0, %c1_i32_76 : i32
    %178 = arith.index_cast %177 : i32 to index
    %179 = memref.load %arg3[%178] : memref<8xi32, #tpu.memory_space<smem>>
    %c6_i32_77 = arith.constant 6 : i32
    %180 = arith.cmpi sgt, %179, %c6_i32_77 : i32
    %181 = arith.andi %176, %180 : i1
    %cst_78 = arith.constant 0xFF800000 : f32
    %182 = vector.broadcast %cst_78 : f32 to vector<16x64xf32>
    %183 = arith.select %181, %160, %182 : vector<16x64xf32>
    %184 = arith.maximumf %158, %183 : vector<16x64xf32>
    %c0_79 = arith.constant 0 : index
    %c7 = arith.constant 7 : index
    %c0_80 = arith.constant 0 : index
    %185 = vector.load %arg4[%c0_79, %c7, %c0_80] : memref<16x8x64xf32, #tpu.memory_space<vmem>>, vector<16x1x64xf32>
    %186 = vector.shape_cast %185 : vector<16x1x64xf32> to vector<16x64xf32>
    %c0_i32_81 = arith.constant 0 : i32
    %187 = arith.addi %0, %c0_i32_81 : i32
    %188 = arith.index_cast %187 : i32 to index
    %189 = memref.load %arg2[%188] : memref<8xi32, #tpu.memory_space<smem>>
    %c7_i32 = arith.constant 7 : i32
    %190 = arith.cmpi sle, %189, %c7_i32 : i32
    %c0_i32_82 = arith.constant 0 : i32
    %191 = arith.addi %0, %c0_i32_82 : i32
    %192 = arith.index_cast %191 : i32 to index
    %193 = memref.load %arg3[%192] : memref<8xi32, #tpu.memory_space<smem>>
    %c7_i32_83 = arith.constant 7 : i32
    %194 = arith.cmpi sgt, %193, %c7_i32_83 : i32
    %195 = arith.andi %190, %194 : i1
    %cst_84 = arith.constant 0xFF800000 : f32
    %196 = vector.broadcast %cst_84 : f32 to vector<16x64xf32>
    %197 = arith.select %195, %186, %196 : vector<16x64xf32>
    %198 = arith.maximumf %172, %197 : vector<16x64xf32>
    %c1_i32_85 = arith.constant 1 : i32
    %199 = arith.addi %0, %c1_i32_85 : i32
    %200 = arith.index_cast %199 : i32 to index
    %201 = memref.load %arg2[%200] : memref<8xi32, #tpu.memory_space<smem>>
    %c7_i32_86 = arith.constant 7 : i32
    %202 = arith.cmpi sle, %201, %c7_i32_86 : i32
    %c1_i32_87 = arith.constant 1 : i32
    %203 = arith.addi %0, %c1_i32_87 : i32
    %204 = arith.index_cast %203 : i32 to index
    %205 = memref.load %arg3[%204] : memref<8xi32, #tpu.memory_space<smem>>
    %c7_i32_88 = arith.constant 7 : i32
    %206 = arith.cmpi sgt, %205, %c7_i32_88 : i32
    %207 = arith.andi %202, %206 : i1
    %cst_89 = arith.constant 0xFF800000 : f32
    %208 = vector.broadcast %cst_89 : f32 to vector<16x64xf32>
    %209 = arith.select %207, %186, %208 : vector<16x64xf32>
    %210 = arith.maximumf %184, %209 : vector<16x64xf32>
    %c0_90 = arith.constant 0 : index
    %c0_91 = arith.constant 0 : index
    %c0_92 = arith.constant 0 : index
    %211 = vector.load %arg5[%c0_90, %c0_91, %c0_92] : memref<1x4x64xf32, #tpu.memory_space<vmem>>, vector<1x1x64xf32>
    %212 = vector.shape_cast %211 : vector<1x1x64xf32> to vector<1x64xf32>
    %213 = vector.broadcast %212 : vector<1x64xf32> to vector<16x64xf32>
    %214 = arith.addf %198, %213 : vector<16x64xf32>
    %cst_93 = arith.constant dense<0xFF800000> : vector<16xf32>
    %215 = vector.multi_reduction <maximumf>, %214, %cst_93 [1] : vector<16x64xf32> to vector<16xf32>
    %216 = vector.shape_cast %215 : vector<16xf32> to vector<16x1xf32>
    %c0_94 = arith.constant 0 : index
    %c1_95 = arith.constant 1 : index
    %c0_96 = arith.constant 0 : index
    %217 = vector.load %arg5[%c0_94, %c1_95, %c0_96] : memref<1x4x64xf32, #tpu.memory_space<vmem>>, vector<1x1x64xf32>
    %218 = vector.shape_cast %217 : vector<1x1x64xf32> to vector<1x64xf32>
    %219 = vector.broadcast %218 : vector<1x64xf32> to vector<16x64xf32>
    %220 = arith.addf %198, %219 : vector<16x64xf32>
    %cst_97 = arith.constant dense<0xFF800000> : vector<16xf32>
    %221 = vector.multi_reduction <maximumf>, %220, %cst_97 [1] : vector<16x64xf32> to vector<16xf32>
    %222 = vector.shape_cast %221 : vector<16xf32> to vector<16x1xf32>
    %c0_98 = arith.constant 0 : index
    %c2_99 = arith.constant 2 : index
    %c0_100 = arith.constant 0 : index
    %223 = vector.load %arg5[%c0_98, %c2_99, %c0_100] : memref<1x4x64xf32, #tpu.memory_space<vmem>>, vector<1x1x64xf32>
    %224 = vector.shape_cast %223 : vector<1x1x64xf32> to vector<1x64xf32>
    %225 = vector.broadcast %224 : vector<1x64xf32> to vector<16x64xf32>
    %226 = arith.addf %198, %225 : vector<16x64xf32>
    %cst_101 = arith.constant dense<0xFF800000> : vector<16xf32>
    %227 = vector.multi_reduction <maximumf>, %226, %cst_101 [1] : vector<16x64xf32> to vector<16xf32>
    %228 = vector.shape_cast %227 : vector<16xf32> to vector<16x1xf32>
    %c0_102 = arith.constant 0 : index
    %c3_103 = arith.constant 3 : index
    %c0_104 = arith.constant 0 : index
    %229 = vector.load %arg5[%c0_102, %c3_103, %c0_104] : memref<1x4x64xf32, #tpu.memory_space<vmem>>, vector<1x1x64xf32>
    %230 = vector.shape_cast %229 : vector<1x1x64xf32> to vector<1x64xf32>
    %231 = vector.broadcast %230 : vector<1x64xf32> to vector<16x64xf32>
    %232 = arith.addf %198, %231 : vector<16x64xf32>
    %cst_105 = arith.constant dense<0xFF800000> : vector<16xf32>
    %233 = vector.multi_reduction <maximumf>, %232, %cst_105 [1] : vector<16x64xf32> to vector<16xf32>
    %234 = vector.shape_cast %233 : vector<16xf32> to vector<16x1xf32>
    %235 = tpu.concatenate %216, %222, %228, %234 in 1 : vector<16x1xf32>, vector<16x1xf32>, vector<16x1xf32>, vector<16x1xf32> -> vector<16x4xf32>
    %c0_106 = arith.constant 0 : index
    %c0_107 = arith.constant 0 : index
    %c0_108 = arith.constant 0 : index
    %236 = vector.load %arg6[%c0_106, %c0_107, %c0_108] : memref<1x16x8xf32, #tpu.memory_space<vmem>>, vector<1x16x4xf32>
    %237 = vector.shape_cast %236 : vector<1x16x4xf32> to vector<16x4xf32>
    %238 = vector.shape_cast %235 : vector<16x4xf32> to vector<1x16x4xf32>
    tpu.vector_store %arg6[%c0_106, %c0_107, %c0_108], %238 {strides = array<i32>} : memref<1x16x8xf32, #tpu.memory_space<vmem>>, vector<1x16x4xf32>,
    %c0_109 = arith.constant 0 : index
    %c0_110 = arith.constant 0 : index
    %c0_111 = arith.constant 0 : index
    %239 = vector.load %arg5[%c0_109, %c0_110, %c0_111] : memref<1x4x64xf32, #tpu.memory_space<vmem>>, vector<1x1x64xf32>
    %240 = vector.shape_cast %239 : vector<1x1x64xf32> to vector<1x64xf32>
    %241 = vector.broadcast %240 : vector<1x64xf32> to vector<16x64xf32>
    %242 = arith.addf %210, %241 : vector<16x64xf32>
    %cst_112 = arith.constant dense<0xFF800000> : vector<16xf32>
    %243 = vector.multi_reduction <maximumf>, %242, %cst_112 [1] : vector<16x64xf32> to vector<16xf32>
    %244 = vector.shape_cast %243 : vector<16xf32> to vector<16x1xf32>
    %c0_113 = arith.constant 0 : index
    %c1_114 = arith.constant 1 : index
    %c0_115 = arith.constant 0 : index
    %245 = vector.load %arg5[%c0_113, %c1_114, %c0_115] : memref<1x4x64xf32, #tpu.memory_space<vmem>>, vector<1x1x64xf32>
    %246 = vector.shape_cast %245 : vector<1x1x64xf32> to vector<1x64xf32>
    %247 = vector.broadcast %246 : vector<1x64xf32> to vector<16x64xf32>
    %248 = arith.addf %210, %247 : vector<16x64xf32>
    %cst_116 = arith.constant dense<0xFF800000> : vector<16xf32>
    %249 = vector.multi_reduction <maximumf>, %248, %cst_116 [1] : vector<16x64xf32> to vector<16xf32>
    %250 = vector.shape_cast %249 : vector<16xf32> to vector<16x1xf32>
    %c0_117 = arith.constant 0 : index
    %c2_118 = arith.constant 2 : index
    %c0_119 = arith.constant 0 : index
    %251 = vector.load %arg5[%c0_117, %c2_118, %c0_119] : memref<1x4x64xf32, #tpu.memory_space<vmem>>, vector<1x1x64xf32>
    %252 = vector.shape_cast %251 : vector<1x1x64xf32> to vector<1x64xf32>
    %253 = vector.broadcast %252 : vector<1x64xf32> to vector<16x64xf32>
    %254 = arith.addf %210, %253 : vector<16x64xf32>
    %cst_120 = arith.constant dense<0xFF800000> : vector<16xf32>
    %255 = vector.multi_reduction <maximumf>, %254, %cst_120 [1] : vector<16x64xf32> to vector<16xf32>
    %256 = vector.shape_cast %255 : vector<16xf32> to vector<16x1xf32>
    %c0_121 = arith.constant 0 : index
    %c3_122 = arith.constant 3 : index
    %c0_123 = arith.constant 0 : index
    %257 = vector.load %arg5[%c0_121, %c3_122, %c0_123] : memref<1x4x64xf32, #tpu.memory_space<vmem>>, vector<1x1x64xf32>
    %258 = vector.shape_cast %257 : vector<1x1x64xf32> to vector<1x64xf32>
    %259 = vector.broadcast %258 : vector<1x64xf32> to vector<16x64xf32>
    %260 = arith.addf %210, %259 : vector<16x64xf32>
    %cst_124 = arith.constant dense<0xFF800000> : vector<16xf32>
    %261 = vector.multi_reduction <maximumf>, %260, %cst_124 [1] : vector<16x64xf32> to vector<16xf32>
    %262 = vector.shape_cast %261 : vector<16xf32> to vector<16x1xf32>
    %263 = tpu.concatenate %244, %250, %256, %262 in 1 : vector<16x1xf32>, vector<16x1xf32>, vector<16x1xf32>, vector<16x1xf32> -> vector<16x4xf32>
    %c0_125 = arith.constant 0 : index
    %c0_126 = arith.constant 0 : index
    %c4_127 = arith.constant 4 : index
    %264 = vector.load %arg6[%c0_125, %c0_126, %c4_127] : memref<1x16x8xf32, #tpu.memory_space<vmem>>, vector<1x16x4xf32>
    %265 = vector.shape_cast %264 : vector<1x16x4xf32> to vector<16x4xf32>
    %266 = vector.shape_cast %263 : vector<16x4xf32> to vector<1x16x4xf32>
    tpu.vector_store %arg6[%c0_125, %c0_126, %c4_127], %266 {strides = array<i32>} : memref<1x16x8xf32, #tpu.memory_space<vmem>>, vector<1x16x4xf32>,
    return
  }
  func.func @transform_0(%arg0: i32, %arg1: memref<4xi32, #tpu.memory_space<smem>>, %arg2: memref<8xi32, #tpu.memory_space<smem>>, %arg3: memref<8xi32, #tpu.memory_space<smem>>) -> (i32, i32, i32) {
    %0 = arith.index_cast %arg0 : i32 to index
    %1 = memref.load %arg1[%0] : memref<4xi32, #tpu.memory_space<smem>>
    %c0_i32 = arith.constant 0 : i32
    %c0_i32_0 = arith.constant 0 : i32
    %c0_i32_1 = arith.constant 0 : i32
    return %1, %c0_i32, %c0_i32_0 : i32, i32, i32
  }
  func.func @transform_1(%arg0: i32, %arg1: memref<4xi32, #tpu.memory_space<smem>>, %arg2: memref<8xi32, #tpu.memory_space<smem>>, %arg3: memref<8xi32, #tpu.memory_space<smem>>) -> (i32, i32, i32) {
    %c0_i32 = arith.constant 0 : i32
    %c0_i32_0 = arith.constant 0 : i32
    %c0_i32_1 = arith.constant 0 : i32
    return %arg0, %c0_i32, %c0_i32_0 : i32, i32, i32
  }
  func.func @transform_2(%arg0: i32, %arg1: memref<4xi32, #tpu.memory_space<smem>>, %arg2: memref<8xi32, #tpu.memory_space<smem>>, %arg3: memref<8xi32, #tpu.memory_space<smem>>) -> (i32, i32, i32) {
    %c0_i32 = arith.constant 0 : i32
    %c0_i32_0 = arith.constant 0 : i32
    %c0_i32_1 = arith.constant 0 : i32
    return %arg0, %c0_i32, %c0_i32_0 : i32, i32, i32
  }
}

</mosaic_0001>

<bundles_post_ra>
// kernel: crop_roi_forward.1
= control target key start
LH: loop header
LB: loop body
LE: loop exit
PB: predicated region body
PF: predicated region fallthrough
CT: control target
= control target key end

     0   :  { %s3547_s0 = inlined_call_operand.vmem [shape: s32[4], index: 0, kind: input, shape index: {}]   ;;  %s3548_s3 = inlined_call_operand.vmem [shape: f32[32,8,64], index: 3, kind: input, shape index: {}]   ;;  %s3549_s4 = inlined_call_operand.vmem [shape: f32[4,4,64], index: 4, kind: input, shape index: {}]   ;;  %s3550_s5 = inlined_call_operand.vmem [shape: f32[4,16,8], index: 5, kind: output, shape index: {}]   ;;  %s3551_s1 = inlined_call_operand.vmem [shape: s32[8], index: 1, kind: input, shape index: {}]   ;;  %s3552_s2 = inlined_call_operand.vmem [shape: s32[8], index: 2, kind: input, shape index: {}]  }
   0x1   :  { %s10_s20 = sshll.u32 %s3547_s0, 4  ;;  %s14_s23 = sshll.u32 %s3551_s1, 4  ;;  %s11_s20 = int_to_ptr.vmem [resolvable:$true] %s10_s20  ;;  %s15_s23 = int_to_ptr.vmem [resolvable:$true] %s14_s23 }
   0x2   :  { %s1717_s24 = scalar_lea.vmem %s11_s20, 16  ;;  %p1722_p1 = scmp.lt.s32.totalorder %s11_s20, %s11_s20 }
   0x3   :  { %p1718_p0 = scmp.ne.s32.totalorder %s11_s20, %s1717_s24  ;;  %p1723_p2 = scmp.lt.s32.totalorder %s1717_s24, %s1717_s24 }
   0x5   :  { %p1724_p3 = por %p1723_p2, %p1722_p1 }
   0x7   :  { %p1725_p4 = pnand %p1724_p3, %p1718_p0 }
   0x9   :  { %1728 = shalt.err (!%p1725_p4)  }
   0xa   :  { %s1763_s25 = smov [#allocation3]   ;;  %s1729_s26 = scalar_lea.vmem %s15_s23, 16 }
   0xb   :  { %13 = dma.vmem_to_smem %s11_s20, 16, %s1763_s25, [#allocation2] }
   0xc   :  { %p1730_p5 = scmp.ne.s32.totalorder %s15_s23, %s1729_s26  ;;  %p1734_p6 = scmp.lt.s32.totalorder %s15_s23, %s15_s23 }
   0xd   :  { %p1735_p7 = scmp.lt.s32.totalorder %s1729_s26, %s1729_s26 }
   0xf   :  { %p1736_p8 = por %p1735_p7, %p1734_p6 }
  0x11   :  { %p1737_p9 = pnand %p1736_p8, %p1730_p5 }
  0x13   :  { %1740 = shalt.err (!%p1737_p9)  }
  0x14   :  { %s1764_s0 = smov [#allocation4]   ;;  %s18_s28 = sshll.u32 %s3552_s2, 4  ;;  %s19_s28 = int_to_ptr.vmem [resolvable:$true] %s18_s28 }
  0x15   :  { %17 = dma.vmem_to_smem %s15_s23, 16, %s1764_s0, [#allocation2] }
  0x16   :  { %s1741_s29 = scalar_lea.vmem %s19_s28, 16  ;;  %p1746_p11 = scmp.lt.s32.totalorder %s19_s28, %s19_s28 }
  0x17   :  { %p1742_p10 = scmp.ne.s32.totalorder %s19_s28, %s1741_s29  ;;  %p1747_p12 = scmp.lt.s32.totalorder %s1741_s29, %s1741_s29 }
  0x19   :  { %p1748_p13 = por %p1747_p12, %p1746_p11 }
  0x1b   :  { %p1749_p0 = pnand %p1748_p13, %p1742_p10 }
  0x1d   :  { %1752 = shalt.err (!%p1749_p0)  }
  0x1e   :  { %s1765_s30 = smov [#allocation5]  }
  0x1f   :  { %21 = dma.vmem_to_smem %s19_s28, 16, %s1765_s30, [#allocation2] }
  0x20   :  { %1757 = dma.done.wait [#allocation2], 48 }
  0x21   :  { %1758 = vsyncadd [#allocation2], 4294967248 }
  0x22   :  { %23 = sfence }
  0x23   :  { %s1806_s6 = smov 0  }
  0x24 LB: > { %s1812_s2 = sadd.s32 4294967295, %s1761_s6   ;;  %p1605_p1 = scmp.ge.s32.totalorder %s1761_s6, 1  ;;  %s1761_s6 = sphi %s1806_s6, %s29_s6  }
  0x25   : > { %p143_p2 = scmp.lt.s32.totalorder %s1761_s6, 5 }
  0x27   : > { %p144_p3 = pnand %p1605_p1, %p143_p2 }
  0x29   : > { %147 = sbr.rel (%p144_p3) target bundleno = 449 (0x1c1), region = 28 }
  0x30   : > { %s170_s7 = sld [smem:[#allocation3 + %s1812_s2]]  ;;  %s1818_s8 = sshll.u32 %s1812_s2, 1  ;;  %vm951_vm7 = vcmask 1041409   ;;  %vm954_vm8 = vcmask 1042434   ;;  %vm957_vm10 = vcmask 1043459   ;;  %vm960_vm11 = vcmask 1044484  }
  0x31   : > { %s229_s9 = sadd.s32 1, %s1818_s8  ;;  %vm963_vm12 = vcmask 1045509   ;;  %vm966_vm13 = vcmask 1046534   ;;  %vm969_vm14 = vcmask 1047559   ;;  %vm987_vm15 = vcmask 523264  }
  0x32   : > { %s1821_s10 = sld [smem:[#allocation4 + %s229_s9]] }
  0x33   : > { %s1823_s11 = sld [smem:[#allocation5 + %s229_s9]] }
  0x36   : > { %s1606_s12 = sshll.u32 %s170_s7, 4 }
  0x37   : > { %p172_p4 = scmp.lt.s32.totalorder %s1606_s12, 31 }
  0x38   : > { %p231_p5 = scmp.le.s32.totalorder %s1821_s10, 0  ;;  %p310_p6 = scmp.le.s32.totalorder %s1821_s10, 1 }
  0x39   : > { %s3694_s12 = smov (!%p172_p4, %s1606_s12), 31  ;;  %p233_p7 = scmp.gt.s32.totalorder %s1823_s11, 0 }
  0x3a   : > { %p311_p8 = scmp.gt.s32.totalorder %s1823_s11, 1  ;;  %s1607_s13 = sshll.u32 %s3694_s12, 3 }
  0x3b   : > { %p234_p9 = pnand %p233_p7, %p231_p5  ;;  %s1832_s17 = scalar_lea.vmem %s3548_s3, %s1607_s13 }
  0x3c   : > { %p312_p10 = pnand %p311_p8, %p310_p6  ;;  %v188_v1 = vld [vmem:[%s1832_s17] sm:$0x1]  ;;  %v189_v2 = vld [vmem:[%s1832_s17 + $0x8] sm:$0x1]  ;;  %v190_v3 = vld [vmem:[%s1832_s17 + $0x10] sm:$0x1] }
  0x3d   : > { %s1613_s14 = scalar_select %p234_p9, 0, 1  ;;  %v191_v4 = vld [vmem:[%s1832_s17 + $0x18] sm:$0x1]  ;;  %v192_v5 = vld [vmem:[%s1832_s17 + $0x20] sm:$0x1] }
  0x3e   : > { %s1615_s18 = scalar_select %p312_p10, 0, 1  ;;  %v193_v6 = vld [vmem:[%s1832_s17 + $0x28] sm:$0x1]  ;;  %v194_v7 = vld [vmem:[%s1832_s17 + $0x30] sm:$0x1] }
  0x3f   : > { %v1834_v0 = vstv %s1613_s14  ;;  %p404_p11 = scmp.le.s32.totalorder %s1821_s10, 2  ;;  %v195_v9 = vld [vmem:[%s1832_s17 + $0x38] sm:$0x1]  ;;  %v255_v10 = vld [vmem:[%s1832_s17 + $0x1] sm:$0x1]  ;;  %p405_p12 = scmp.gt.s32.totalorder %s1823_s11, 2 }
  0x40   : > { %v1844_v8 = vstv %s1615_s18  ;;  %vm238_vm0 = vcmp.eq.s32.totalorder %v1834_v0, 1  ;;  %v256_v11 = vld [vmem:[%s1832_s17 + $0x9] sm:$0x1]  ;;  %v257_v12 = vld [vmem:[%s1832_s17 + $0x11] sm:$0x1]  ;;  %p498_p0 = scmp.le.s32.totalorder %s1821_s10, 3 }
  0x41   : > { %v258_v13 = vld [vmem:[%s1832_s17 + $0x19] sm:$0x1]  ;;  %v259_v14 = vld [vmem:[%s1832_s17 + $0x21] sm:$0x1]  ;;  %v260_v15 = vld [vmem:[%s1832_s17 + $0x29] sm:$0x1]  ;;  %p1858_p13 = pnand %p405_p12, %p404_p11 }
  0x42   : > { %vm316_vm1 = vcmp.eq.s32.totalorder %v1844_v8, 1  ;;  %v239_v16 = vsel %vm238_vm0, %v188_v1, -inf  ;;  %v240_v17 = vsel %vm238_vm0, %v189_v2, -inf  ;;  %v241_v18 = vsel %vm238_vm0, %v190_v3, -inf  ;;  %v261_v20 = vld [vmem:[%s1832_s17 + $0x31] sm:$0x1] }
  0x43   : > { %v1870_v19 = vsel %vm238_vm0, %v191_v4, -inf  ;;  %v262_v21 = vld [vmem:[%s1832_s17 + $0x39] sm:$0x1]  ;;  %v243_v22 = vsel %vm238_vm0, %v192_v5, -inf  ;;  %v244_v23 = vsel %vm238_vm0, %v193_v6, -inf  ;;  %v1880_v24 = vsel %vm238_vm0, %v194_v7, -inf }
  0x44   : > { %v1884_v25 = vsel %vm238_vm0, %v195_v9, -inf  ;;  %s1617_s20 = scalar_select %p1858_p13, 0, 1  ;;  %v317_v26 = vsel %vm316_vm1, %v255_v10, -inf  ;;  %v318_v27 = vsel %vm316_vm1, %v256_v11, -inf  ;;  %v319_v31 = vsel %vm316_vm1, %v257_v12, -inf }
  0x45   : > { %v349_v28 = vld [vmem:[%s1832_s17 + $0x2] sm:$0x1]  ;;  %v350_v29 = vld [vmem:[%s1832_s17 + $0xa] sm:$0x1]  ;;  %v351_v30 = vld [vmem:[%s1832_s17 + $0x12] sm:$0x1]  ;;  %v333_v40 = vmax.f32 %v239_v16, %v317_v26  ;;  %v334_v43 = vmax.f32 %v240_v17, %v318_v27  ;;  %v335_v44 = vmax.f32 %v241_v18, %v319_v31 }
  0x46   : > { %v320_v32 = vsel %vm316_vm1, %v258_v13, -inf  ;;  %v321_v33 = vsel %vm316_vm1, %v259_v14, -inf  ;;  %v1901_v34 = vstv %s1617_s20  ;;  %p499_p1 = scmp.gt.s32.totalorder %s1823_s11, 3  ;;  %v322_v35 = vsel %vm316_vm1, %v260_v15, -inf  ;;  %v352_v36 = vld [vmem:[%s1832_s17 + $0x1a] sm:$0x1] }
  0x47   : > { %v353_v37 = vld [vmem:[%s1832_s17 + $0x22] sm:$0x1]  ;;  %vm410_vm2 = vcmp.eq.s32.totalorder %v1901_v34, 1  ;;  %v323_v38 = vsel %vm316_vm1, %v261_v20, -inf  ;;  %v324_v39 = vsel %vm316_vm1, %v262_v21, -inf  ;;  %v336_v45 = vmax.f32 %v1870_v19, %v320_v32  ;;  %p592_p3 = scmp.le.s32.totalorder %s1821_s10, 4 }
  0x48   : > { %v354_v41 = vld [vmem:[%s1832_s17 + $0x2a] sm:$0x1]  ;;  %v355_v42 = vld [vmem:[%s1832_s17 + $0x32] sm:$0x1]  ;;  %p1916_p2 = pnand %p499_p1, %p498_p0  ;;  %v337_v46 = vmax.f32 %v243_v22, %v321_v33  ;;  %v356_v47 = vld [vmem:[%s1832_s17 + $0x3a] sm:$0x1]  ;;  %v338_v49 = vmax.f32 %v244_v23, %v322_v35  ;;  %v339_v55 = vmax.f32 %v1880_v24, %v323_v38  ;;  %v340_v60 = vmax.f32 %v1884_v25, %v324_v39 }
  0x49   : > { %v443_v48 = vld [vmem:[%s1832_s17 + $0x3] sm:$0x1]  ;;  %v411_v50 = vsel %vm410_vm2, %v349_v28, -inf  ;;  %v412_v51 = vsel %vm410_vm2, %v350_v29, -inf  ;;  %v413_v52 = vsel %vm410_vm2, %v351_v30, -inf  ;;  %v414_v56 = vsel %vm410_vm2, %v352_v36, -inf }
  0x4a   : > { %v444_v53 = vld [vmem:[%s1832_s17 + $0xb] sm:$0x1]  ;;  %v445_v54 = vld [vmem:[%s1832_s17 + $0x13] sm:$0x1]  ;;  %s1619_s22 = scalar_select %p1916_p2, 0, 1  ;;  %v427_v2 = vmax.f32 %v333_v40, %v411_v50  ;;  %v428_v3 = vmax.f32 %v334_v43, %v412_v51  ;;  %v429_v4 = vmax.f32 %v335_v44, %v413_v52  ;;  %v430_v7 = vmax.f32 %v336_v45, %v414_v56 }
  0x4b   : > { %v415_v57 = vsel %vm410_vm2, %v353_v37, -inf  ;;  %v416_v58 = vsel %vm410_vm2, %v354_v41, -inf  ;;  %v446_v59 = vld [vmem:[%s1832_s17 + $0x1b] sm:$0x1]  ;;  %p593_p4 = scmp.gt.s32.totalorder %s1823_s11, 4  ;;  %v417_v61 = vsel %vm410_vm2, %v355_v42, -inf }
  0x4c   : > { %v418_v62 = vsel %vm410_vm2, %v356_v47, -inf  ;;  %v447_v63 = vld [vmem:[%s1832_s17 + $0x23] sm:$0x1]  ;;  %v1949_v1 = vstv %s1619_s22  ;;  %p686_p5 = scmp.le.s32.totalorder %s1821_s10, 5  ;;  %v448_v5 = vld [vmem:[%s1832_s17 + $0x2b] sm:$0x1]  ;;  %v431_v9 = vmax.f32 %v337_v46, %v415_v57  ;;  %v432_v10 = vmax.f32 %v338_v49, %v416_v58 }
  0x4d   : > { %v449_v6 = vld [vmem:[%s1832_s17 + $0x33] sm:$0x1]  ;;  %vm504_vm3 = vcmp.eq.s32.totalorder %v1949_v1, 1  ;;  %p1959_p6 = pnand %p593_p4, %p592_p3  ;;  %p687_p7 = scmp.gt.s32.totalorder %s1823_s11, 5  ;;  %v450_v11 = vld [vmem:[%s1832_s17 + $0x3b] sm:$0x1]  ;;  %v433_v13 = vmax.f32 %v339_v55, %v417_v61  ;;  %v434_v22 = vmax.f32 %v340_v60, %v418_v62 }
  0x4e   : > { %v505_v12 = vsel %vm504_vm3, %v443_v48, -inf  ;;  %v506_v14 = vsel %vm504_vm3, %v444_v53, -inf  ;;  %v507_v15 = vsel %vm504_vm3, %v445_v54, -inf  ;;  %v508_v16 = vsel %vm504_vm3, %v446_v59, -inf  ;;  %v537_v17 = vld [vmem:[%s1832_s17 + $0x4] sm:$0x1] }
  0x4f   : > { %s1621_s24 = scalar_select %p1959_p6, 0, 1  ;;  %v509_v18 = vsel %vm504_vm3, %v447_v63, -inf  ;;  %v510_v19 = vsel %vm504_vm3, %v448_v5, -inf  ;;  %v511_v20 = vsel %vm504_vm3, %v449_v6, -inf  ;;  %v512_v23 = vsel %vm504_vm3, %v450_v11, -inf }
  0x50   : > { %v538_v21 = vld [vmem:[%s1832_s17 + $0xc] sm:$0x1]  ;;  %p1987_p8 = pnand %p687_p7, %p686_p5  ;;  %v521_v24 = vmax.f32 %v427_v2, %v505_v12  ;;  %v539_v25 = vld [vmem:[%s1832_s17 + $0x14] sm:$0x1]  ;;  %v540_v26 = vld [vmem:[%s1832_s17 + $0x1c] sm:$0x1]  ;;  %v522_v27 = vmax.f32 %v428_v3, %v506_v14  ;;  %v523_v28 = vmax.f32 %v429_v4, %v507_v15  ;;  %v524_v29 = vmax.f32 %v430_v7, %v508_v16 }
  0x51   : > { %v541_v30 = vld [vmem:[%s1832_s17 + $0x24] sm:$0x1]  ;;  %v542_v31 = vld [vmem:[%s1832_s17 + $0x2c] sm:$0x1]  ;;  %v543_v32 = vld [vmem:[%s1832_s17 + $0x34] sm:$0x1]  ;;  %v1998_v33 = vstv %s1621_s24  ;;  %v525_v35 = vmax.f32 %v431_v9, %v509_v18  ;;  %v526_v36 = vmax.f32 %v432_v10, %v510_v19  ;;  %v527_v37 = vmax.f32 %v433_v13, %v511_v20 }
  0x52   : > { %v544_v38 = vld [vmem:[%s1832_s17 + $0x3c] sm:$0x1]  ;;  %vm598_vm4 = vcmp.eq.s32.totalorder %v1998_v33, 1  ;;  %p780_p9 = scmp.le.s32.totalorder %s1821_s10, 6  ;;  %p781_p10 = scmp.gt.s32.totalorder %s1823_s11, 6  ;;  %v528_v43 = vmax.f32 %v434_v22, %v512_v23 }
  0x53   : > { %v599_v39 = vsel %vm598_vm4, %v537_v17, -inf  ;;  %v600_v40 = vsel %vm598_vm4, %v538_v21, -inf  ;;  %v601_v41 = vsel %vm598_vm4, %v539_v25, -inf  ;;  %v602_v42 = vsel %vm598_vm4, %v540_v26, -inf  ;;  %s1623_s26 = scalar_select %p1987_p8, 0, 1 }
  0x54   : > { %p178_p11 = scmp.lt.s32.totalorder %s1812_s2, 3  ;;  %v603_v44 = vsel %vm598_vm4, %v541_v30, -inf  ;;  %v604_v45 = vsel %vm598_vm4, %v542_v31, -inf  ;;  %v605_v46 = vsel %vm598_vm4, %v543_v32, -inf  ;;  %v631_v47 = vld [vmem:[%s1832_s17 + $0x5] sm:$0x1]  ;;  %p2028_p12 = pnand %p781_p10, %p780_p9  ;;  %v2036_v53 = vmax.f32 %v521_v24, %v599_v39 }
  0x55   : > { %v632_v48 = vld [vmem:[%s1832_s17 + $0xd] sm:$0x1]  ;;  %v633_v49 = vld [vmem:[%s1832_s17 + $0x15] sm:$0x1]  ;;  %v606_v50 = vsel %vm598_vm4, %v544_v38, -inf  ;;  %v2038_v54 = vmax.f32 %v522_v27, %v600_v40  ;;  %v2040_v55 = vmax.f32 %v523_v28, %v601_v41  ;;  %v2042_v56 = vmax.f32 %v524_v29, %v602_v42  ;;  %p874_p13 = scmp.le.s32.totalorder %s1821_s10, 7 }
  0x56   : > { %v634_v51 = vld [vmem:[%s1832_s17 + $0x1d] sm:$0x1]  ;;  %v635_v52 = vld [vmem:[%s1832_s17 + $0x25] sm:$0x1]  ;;  %v636_v57 = vld [vmem:[%s1832_s17 + $0x2d] sm:$0x1]  ;;  %v2048_v59 = vmax.f32 %v525_v35, %v603_v44  ;;  %v2050_v60 = vmax.f32 %v526_v36, %v604_v45  ;;  %v2052_v61 = vmax.f32 %v527_v37, %v605_v46  ;;  %v2055_v63 = vstv %s1623_s26 }
  0x57   : > { %v637_v58 = vld [vmem:[%s1832_s17 + $0x35] sm:$0x1]  ;;  %s1625_s1 = scalar_select %p2028_p12, 0, 1  ;;  %v638_v62 = vld [vmem:[%s1832_s17 + $0x3d] sm:$0x1]  ;;  %v2067_v3 = vmax.f32 %v528_v43, %v606_v50 }
  0x58   : > { %p875_p0 = scmp.gt.s32.totalorder %s1823_s11, 7  ;;  %v2060_v2 = vld [vmem:[%s1832_s17 + $0x40] sm:$0x1]  ;;  %s3696_s2 = smov (!%p178_p11, %s1812_s2), 3  ;;  %vm692_vm5 = vcmp.eq.s32.totalorder %v2055_v63, 1 }
  0x59   : > { %v2070_v4 = vstv %s1625_s1  ;;  %v2075_v5 = vsel %vm238_vm0, %v2060_v2, -inf  ;;  %v693_v6 = vsel %vm692_vm5, %v631_v47, -inf  ;;  %v694_v7 = vsel %vm692_vm5, %v632_v48, -inf  ;;  %v725_v11 = vld [vmem:[%s1832_s17 + $0x6] sm:$0x1]  ;;  %s1608_s29 = sshll.u32 %s3696_s2, 2 }
  0x5a   : > { %v695_v9 = vsel %vm692_vm5, %v633_v49, -inf  ;;  %v696_v10 = vsel %vm692_vm5, %v634_v51, -inf  ;;  %v726_v12 = vld [vmem:[%s1832_s17 + $0xe] sm:$0x1]  ;;  %v727_v13 = vld [vmem:[%s1832_s17 + $0x16] sm:$0x1]  ;;  %p2092_p1 = pnand %p875_p0, %p874_p13  ;;  %v709_v20 = vmax.f32 %v2036_v53, %v693_v6  ;;  %v710_v21 = vmax.f32 %v2038_v54, %v694_v7  ;;  %s2172_s9 = scalar_lea.vmem %s3549_s4, %s1608_s29 }
  0x5b   : > { %v2097_v14 = vld [vmem:[%s1832_s17 + $0x48] sm:$0x1]  ;;  %v697_v15 = vsel %vm692_vm5, %v635_v52, -inf  ;;  %v698_v16 = vsel %vm692_vm5, %v636_v57, -inf  ;;  %v699_v17 = vsel %vm692_vm5, %v637_v58, -inf  ;;  %v700_v18 = vsel %vm692_vm5, %v638_v62, -inf }
  0x5c   : > { %v2108_v19 = vld [vmem:[%s1832_s17 + $0x50] sm:$0x1]  ;;  %v711_v22 = vmax.f32 %v2040_v55, %v695_v9  ;;  %v712_v23 = vmax.f32 %v2042_v56, %v696_v10  ;;  %v728_v24 = vld [vmem:[%s1832_s17 + $0x1e] sm:$0x1]  ;;  %v729_v25 = vld [vmem:[%s1832_s17 + $0x26] sm:$0x1]  ;;  %v713_v26 = vmax.f32 %v2048_v59, %v697_v15  ;;  %v714_v27 = vmax.f32 %v2050_v60, %v698_v16 }
  0x5d   : > { %s1627_s28 = scalar_select %p2092_p1, 0, 1  ;;  %v715_v28 = vmax.f32 %v2052_v61, %v699_v17  ;;  %v716_v29 = vmax.f32 %v2067_v3, %v700_v18  ;;  %v730_v30 = vld [vmem:[%s1832_s17 + $0x2e] sm:$0x1]  ;;  %v731_v31 = vld [vmem:[%s1832_s17 + $0x36] sm:$0x1] }
  0x5e   : > { %v732_v32 = vld [vmem:[%s1832_s17 + $0x3e] sm:$0x1]  ;;  %vm786_vm6 = vcmp.eq.s32.totalorder %v2070_v4, 1  ;;  %v2130_v36 = vld [vmem:[%s1832_s17 + $0x58] sm:$0x1]  ;;  %v2135_v37 = vsel %vm238_vm0, %v2097_v14, -inf }
  0x5f   : > { %v2127_v35 = vstv %s1627_s28  ;;  %v2140_v38 = vsel %vm238_vm0, %v2108_v19, -inf  ;;  %v787_v39 = vsel %vm786_vm6, %v725_v11, -inf  ;;  %v788_v40 = vsel %vm786_vm6, %v726_v12, -inf  ;;  %v819_v43 = vld [vmem:[%s1832_s17 + $0x7] sm:$0x1]  ;;  %s2697_s10 = sld [smem:[#allocation4 + %s1818_s8]] }
  0x60   : > { %v789_v41 = vsel %vm786_vm6, %v727_v13, -inf  ;;  %v790_v42 = vsel %vm786_vm6, %v728_v24, -inf  ;;  %v820_v44 = vld [vmem:[%s1832_s17 + $0xf] sm:$0x1]  ;;  %v2153_v45 = vld [vmem:[%s1832_s17 + $0x60] sm:$0x1]  ;;  %v803_v51 = vmax.f32 %v709_v20, %v787_v39  ;;  %v804_v52 = vmax.f32 %v710_v21, %v788_v40 }
  0x61   : > { %v791_v46 = vsel %vm786_vm6, %v729_v25, -inf  ;;  %v792_v47 = vsel %vm786_vm6, %v730_v30, -inf  ;;  %v793_v48 = vsel %vm786_vm6, %v731_v31, -inf  ;;  %v794_v49 = vsel %vm786_vm6, %v732_v32, -inf  ;;  %v2164_v50 = vld [vmem:[%s1832_s17 + $0x68] sm:$0x1] }
  0x62   : > { %v805_v53 = vmax.f32 %v711_v22, %v789_v41  ;;  %v806_v54 = vmax.f32 %v712_v23, %v790_v42  ;;  %v821_v55 = vld [vmem:[%s1832_s17 + $0x17] sm:$0x1]  ;;  %v822_v56 = vld [vmem:[%s1832_s17 + $0x1f] sm:$0x1]  ;;  %v823_v57 = vld [vmem:[%s1832_s17 + $0x27] sm:$0x1]  ;;  %v807_v58 = vmax.f32 %v713_v26, %v791_v46  ;;  %v808_v59 = vmax.f32 %v714_v27, %v792_v47 }
  0x63   : > { %v809_v60 = vmax.f32 %v715_v28, %v793_v48  ;;  %v810_v61 = vmax.f32 %v716_v29, %v794_v49  ;;  %v824_v62 = vld [vmem:[%s1832_s17 + $0x2f] sm:$0x1]  ;;  %v825_v3 = vld [vmem:[%s1832_s17 + $0x37] sm:$0x1]  ;;  %v826_v6 = vld [vmem:[%s1832_s17 + $0x3f] sm:$0x1] }
  0x64   : > { %vm880_vm9 = vcmp.eq.s32.totalorder %v2127_v35, 1  ;;  %v2181_v7 = vsel %vm238_vm0, %v2130_v36, -inf  ;;  %v2186_v9 = vsel %vm238_vm0, %v2153_v45, -inf  ;;  %v2191_v10 = vsel %vm238_vm0, %v2164_v50, -inf  ;;  %v2210_v21 = vld [vmem:[%s2172_s9 + $0x1] ss:$0 sm:$0xff] }
  0x65   : > { %v881_v11 = vsel %vm880_vm9, %v819_v43, -inf  ;;  %v882_v12 = vsel %vm880_vm9, %v820_v44, -inf  ;;  %v883_v13 = vsel %vm880_vm9, %v821_v55, -inf  ;;  %v884_v15 = vsel %vm880_vm9, %v822_v56, -inf  ;;  %v2245_v44 = vld [vmem:[%s2172_s9] ss:$0 sm:$0xff] }
  0x66   : > { %v885_v16 = vsel %vm880_vm9, %v823_v57, -inf  ;;  %v886_v17 = vsel %vm880_vm9, %v824_v62, -inf  ;;  %v887_v18 = vsel %vm880_vm9, %v825_v3, -inf  ;;  %v888_v20 = vsel %vm880_vm9, %v826_v6, -inf  ;;  %v2264_v3 = vld [vmem:[%s1832_s17 + $0x70] sm:$0x1] }
  0x67   : > { %v2212_v22 = vmax.f32 %v803_v51, %v881_v11  ;;  %v2214_v23 = vmax.f32 %v804_v52, %v882_v12  ;;  %v2216_v24 = vmax.f32 %v805_v53, %v883_v13  ;;  %v2218_v25 = vmax.f32 %v806_v54, %v884_v15  ;;  %v2267_v6 = vld [vmem:[%s1832_s17 + $0x78] sm:$0x1]  ;;  %s2700_s11 = sld [smem:[#allocation5 + %s1818_s8]]  ;;  %p205_p2 = scmp.le.s32.totalorder %s2697_s10, 0 }
  0x68   : > { %v2220_v26 = vmax.f32 %v807_v58, %v885_v16  ;;  %v2222_v27 = vmax.f32 %v808_v59, %v886_v17  ;;  %v2224_v28 = vmax.f32 %v809_v60, %v887_v18  ;;  %v2226_v29 = vmax.f32 %v810_v61, %v888_v20  ;;  %v2273_v16 = vld [vmem:[%s1832_s17 + $0x41] sm:$0x1]  ;;  %v2276_v17 = vld [vmem:[%s1832_s17 + $0x49] sm:$0x1]  ;;  %p271_p4 = scmp.le.s32.totalorder %s2697_s10, 1  ;;  %p365_p8 = scmp.le.s32.totalorder %s2697_s10, 2 }
  0x69   : > { %v1303_v30 = vadd.f32 %v2210_v21, %v2212_v22  ;;  %v1304_v31 = vadd.f32 %v2210_v21, %v2214_v23  ;;  %v1305_v32 = vadd.f32 %v2210_v21, %v2216_v24  ;;  %v1306_v39 = vadd.f32 %v2210_v21, %v2218_v25  ;;  %p459_p10 = scmp.le.s32.totalorder %s2697_s10, 3  ;;  %p553_p13 = scmp.le.s32.totalorder %s2697_s10, 4 }
  0x6a   : > { %v1307_v40 = vadd.f32 %v2210_v21, %v2220_v26  ;;  %v1308_v41 = vadd.f32 %v2210_v21, %v2222_v27  ;;  %v1309_v42 = vadd.f32 %v2210_v21, %v2224_v28  ;;  %v1310_v43 = vadd.f32 %v2210_v21, %v2226_v29  ;;  %p647_p1 = scmp.le.s32.totalorder %s2697_s10, 5  ;;  %s1638_s1 = sshll.u32 %s3696_s2, 4 }
  0x6b   : > { %v1335_v46 = vrot.slane %v1304_v31, 7  ;;  %v1337_v47 = vrot.slane %v1305_v32, 6  ;;  %v1339_v48 = vrot.slane %v1306_v39, 5  ;;  %v1230_v49 = vadd.f32 %v2245_v44, %v2212_v22  ;;  %v2280_v32 = vld [vmem:[%s1832_s17 + $0x51] sm:$0x1]  ;;  %s186_s29 = scalar_lea.vmem %s3550_s5, %s1638_s1 }
  0x6c   : > { %v1341_v51 = vrot.slane %v1307_v40, 4  ;;  %v1343_v52 = vrot.slane %v1308_v41, 3  ;;  %v1345_v53 = vrot.slane %v1309_v42, 2  ;;  %v1347_v54 = vrot.slane %v1310_v43, 1  ;;  %v2285_v43 = vld [vmem:[%s1832_s17 + $0x59] sm:$0x1] }
  0x6d   : > { %v1336_v55 = vsel %vm951_vm7, %v1335_v46, %v1303_v30  ;;  %v1231_v56 = vadd.f32 %v2245_v44, %v2214_v23  ;;  %v1232_v57 = vadd.f32 %v2245_v44, %v2216_v24  ;;  %v1233_v58 = vadd.f32 %v2245_v44, %v2218_v25  ;;  %v2288_v46 = vld [vmem:[%s1832_s17 + $0x61] sm:$0x1]  ;;  %p207_p3 = scmp.gt.s32.totalorder %s2700_s11, 0  ;;  %p272_p5 = scmp.gt.s32.totalorder %s2700_s11, 1 }
  0x6e   : > { %v1338_v59 = vsel %vm954_vm8, %v1337_v47, %v1336_v55  ;;  %v1234_v60 = vadd.f32 %v2245_v44, %v2220_v26  ;;  %v1235_v61 = vadd.f32 %v2245_v44, %v2222_v27  ;;  %v1236_v62 = vadd.f32 %v2245_v44, %v2224_v28  ;;  %v2302_v55 = vld [vmem:[%s1832_s17 + $0x71] sm:$0x1]  ;;  %p366_p9 = scmp.gt.s32.totalorder %s2700_s11, 2  ;;  %p460_p11 = scmp.gt.s32.totalorder %s2700_s11, 3 }
  0x6f   : > { %v1340_v11 = vsel %vm957_vm10, %v1339_v48, %v1338_v59  ;;  %v1237_v12 = vadd.f32 %v2245_v44, %v2226_v29  ;;  %v1262_v13 = vrot.slane %v1231_v56, 7  ;;  %v1264_v15 = vrot.slane %v1232_v57, 6  ;;  %v2307_v57 = vld [vmem:[%s1832_s17 + $0x79] sm:$0x1]  ;;  %p2763_p6 = pnand %p207_p3, %p205_p2  ;;  %p2778_p7 = pnand %p272_p5, %p271_p4 }
  0x70   : > { %v1342_v18 = vsel %vm960_vm11, %v1341_v51, %v1340_v11  ;;  %v1266_v20 = vrot.slane %v1233_v58, 5  ;;  %v1268_v30 = vrot.slane %v1234_v60, 4  ;;  %v1270_v31 = vrot.slane %v1235_v61, 3  ;;  %3601 = vst [vmem:[#allocation7_spill] sm:$0xff] %v2307_v57  ;;  %v2327_v11 = vld [vmem:[%s1832_s17 + $0x4a] sm:$0x1]  ;;  %p2820_p12 = pnand %p366_p9, %p365_p8  ;;  %p2840_p3 = pnand %p460_p11, %p459_p10 }
  0x71   : > { %v1344_v39 = vsel %vm963_vm12, %v1343_v52, %v1342_v18  ;;  %v1263_v40 = vsel %vm951_vm7, %v1262_v13, %v1230_v49  ;;  %v1272_v41 = vrot.slane %v1236_v62, 2  ;;  %v1274_v42 = vrot.slane %v1237_v12, 1  ;;  %v2299_v52 = vld [vmem:[%s1832_s17 + $0x69] sm:$0x1]  ;;  %v2324_v62 = vld [vmem:[%s1832_s17 + $0x42] sm:$0x1] }
  0x72   : > { %v1346_v47 = vsel %vm966_vm13, %v1345_v53, %v1344_v39  ;;  %v1265_v48 = vsel %vm954_vm8, %v1264_v15, %v1263_v40  ;;  %v253_v51 = vsel %vm238_vm0, %v2264_v3, -inf  ;;  %v254_v49 = vsel %vm238_vm0, %v2267_v6, -inf  ;;  %3602 = vst [vmem:[#allocation8_spill] sm:$0xff] %v2324_v62  ;;  %3603 = vst [vmem:[#allocation9_spill] sm:$0xff] %v2327_v11  ;;  %s1612_s13 = scalar_select %p2763_p6, 0, 1 }
  0x73   : > { %v1348_v56 = vsel %vm969_vm14, %v1347_v54, %v1346_v47  ;;  %v1267_v53 = vsel %vm957_vm10, %v1266_v20, %v1265_v48  ;;  %v325_v58 = vsel %vm316_vm1, %v2273_v16, -inf  ;;  %v326_v0 = vsel %vm316_vm1, %v2276_v17, -inf  ;;  %v2340_v20 = vld [vmem:[%s1832_s17 + $0x52] sm:$0x1]  ;;  %v2349_v47 = vld [vmem:[%s1832_s17 + $0x5a] sm:$0x1] }
  0x74   : > { %v1365_v59 = vsel %vm987_vm15, %v1348_v56, -inf  ;;  %v1269_v60 = vsel %vm960_vm11, %v1268_v30, %v1267_v53  ;;  %v327_v54 = vsel %vm316_vm1, %v2280_v32, -inf  ;;  %v328_v61 = vsel %vm316_vm1, %v2285_v43, -inf  ;;  %3604 = vst [vmem:[#allocation10_spill] sm:$0xff] %v2340_v20  ;;  %3605 = vst [vmem:[#allocation11_spill] sm:$0xff] %v2349_v47  ;;  %p554_p0 = scmp.gt.s32.totalorder %s2700_s11, 4 }
  0x75   : > { %1366 = vmax.xlane.f32.xlu1 %v1365_v59  ;;  %v1271_v12 = vsel %vm963_vm12, %v1270_v31, %v1269_v60  ;;  %v329_v13 = vsel %vm316_vm1, %v2288_v46, -inf  ;;  %v330_v15 = vsel %vm316_vm1, %v2299_v52, -inf  ;;  %v331_v18 = vsel %vm316_vm1, %v2302_v55, -inf  ;;  %v2352_v48 = vld [vmem:[%s1832_s17 + $0x62] sm:$0x1]  ;;  %p648_p2 = scmp.gt.s32.totalorder %s2700_s11, 5 }
  0x76   : > { %v1273_v30 = vsel %vm966_vm13, %v1272_v41, %v1271_v12  ;;  %v332_v31 = vsel %vm316_vm1, %v2307_v57, -inf  ;;  %v341_v39 = vmax.f32 %v2075_v5, %v325_v58  ;;  %v342_v40 = vmax.f32 %v2135_v37, %v326_v0  ;;  %3606 = vst [vmem:[#allocation12_spill] sm:$0xff] %v2352_v48  ;;  %v2359_v59 = vld [vmem:[%s1832_s17 + $0x6a] sm:$0x1]  ;;  %v2362_v5 = vld [vmem:[%s1832_s17 + $0x72] sm:$0x1]  ;;  %p2865_p4 = pnand %p554_p0, %p553_p13 }
  0x77   : > { %v1275_v56 = vsel %vm969_vm14, %v1274_v42, %v1273_v30  ;;  %v343_v53 = vmax.f32 %v2140_v38, %v327_v54  ;;  %v344_v41 = vmax.f32 %v2181_v7, %v328_v61  ;;  %v345_v8 = vmax.f32 %v2186_v9, %v329_v13  ;;  %3607 = vst [vmem:[#allocation13_spill] sm:$0xff] %v2359_v59  ;;  %v2365_v58 = vld [vmem:[%s1832_s17 + $0x7a] sm:$0x1]  ;;  %v2370_v12 = vld [vmem:[%s1832_s17 + $0x43] sm:$0x1]  ;;  %p2883_p5 = pnand %p648_p2, %p647_p1  ;;  %p741_p6 = scmp.le.s32.totalorder %s2697_s10, 6 }
  0x78   : > { %3608 = vst [vmem:[#allocation14_spill] sm:$0xff] %v2362_v5  ;;  %3609 = vst [vmem:[#allocation15_spill] sm:$0xff] %v2365_v58  ;;  %v1292_v37 = vsel %vm987_vm15, %v1275_v56, -inf  ;;  %v346_v0 = vmax.f32 %v2191_v10, %v330_v15  ;;  %v347_v60 = vmax.f32 %v253_v51, %v331_v18  ;;  %v348_v42 = vmax.f32 %v254_v49, %v332_v31  ;;  %v2373_v38 = vld [vmem:[%s1832_s17 + $0x4b] sm:$0x1]  ;;  %p835_p8 = scmp.le.s32.totalorder %s2697_s10, 7 }
  0x79   : > { %3610 = vst [vmem:[#allocation16_spill] sm:$0xff] %v2373_v38  ;;  %v2376_v7 = vld [vmem:[%s1832_s17 + $0x53] sm:$0x1]  ;;  %1293 = vmax.xlane.f32.xlu0 %v1292_v37  ;;  %v419_v9 = vsel %vm410_vm2, %v2324_v62, -inf  ;;  %v420_v10 = vsel %vm410_vm2, %v2327_v11, -inf  ;;  %v421_v51 = vsel %vm410_vm2, %v2340_v20, -inf }
  0x7a   : > { %3611 = vst [vmem:[#allocation17_spill] sm:$0xff] %v2376_v7  ;;  %v422_v49 = vsel %vm410_vm2, %v2349_v47, -inf  ;;  %v2391_v54 = vld [vmem:[%s1832_s17 + $0x5b] sm:$0x1]  ;;  %v423_v61 = vsel %vm410_vm2, %v2352_v48, -inf  ;;  %v424_v13 = vsel %vm410_vm2, %v2359_v59, -inf  ;;  %v435_v31 = vmax.f32 %v341_v39, %v419_v9 }
  0x7b   : > { %3612 = vst [vmem:[#allocation18_spill] sm:$0xff] %v2391_v54  ;;  %v425_v15 = vsel %vm410_vm2, %v2362_v5, -inf  ;;  %v426_v18 = vsel %vm410_vm2, %v2365_v58, -inf  ;;  %v2406_v30 = vld [vmem:[%s1832_s17 + $0x63] sm:$0x1]  ;;  %v436_v56 = vmax.f32 %v342_v40, %v420_v10  ;;  %v437_v37 = vmax.f32 %v343_v53, %v421_v51  ;;  %p836_p9 = scmp.gt.s32.totalorder %s2700_s11, 7 }
  0x7c   : > { %3613 = vst [vmem:[#allocation19_spill] sm:$0xff] %v2406_v30  ;;  %v438_v48 = vmax.f32 %v344_v41, %v422_v49  ;;  %v2409_v47 = vld [vmem:[%s1832_s17 + $0x6b] sm:$0x1]  ;;  %v2412_v59 = vld [vmem:[%s1832_s17 + $0x73] sm:$0x1]  ;;  %v439_v11 = vmax.f32 %v345_v8, %v423_v61  ;;  %v440_v5 = vmax.f32 %v346_v0, %v424_v13  ;;  %v441_v62 = vmax.f32 %v347_v60, %v425_v15 }
  0x7d   : > { %3614 = vst [vmem:[#allocation20_spill] sm:$0xff] %v2409_v47  ;;  %3615 = vst [vmem:[#allocation21_spill] sm:$0xff] %v2412_v59  ;;  %v2415_v20 = vld [vmem:[%s1832_s17 + $0x7b] sm:$0x1]  ;;  %v442_v34 = vmax.f32 %v348_v42, %v426_v18  ;;  %v2418_v57 = vld [vmem:[%s1832_s17 + $0x44] sm:$0x1]  ;;  %p2981_p11 = pnand %p836_p9, %p835_p8 }
  0x7e   : > { %3616 = vst [vmem:[#allocation22_spill] sm:$0xff] %v2415_v20  ;;  %v2421_v58 = vld [vmem:[%s1832_s17 + $0x4c] sm:$0x1]  ;;  %v2424_v39 = vld [vmem:[%s1832_s17 + $0x54] sm:$0x1]  ;;  %v513_v40 = vsel %vm504_vm3, %v2370_v12, -inf }
  0x7f   : > { %3617 = vst [vmem:[#allocation23_spill] sm:$0xff] %v2421_v58  ;;  %3618 = vst [vmem:[#allocation24_spill] sm:$0xff] %v2424_v39  ;;  %v514_v53 = vsel %vm504_vm3, %v2373_v38, -inf  ;;  %v515_v41 = vsel %vm504_vm3, %v2376_v7, -inf  ;;  %v516_v8 = vsel %vm504_vm3, %v2391_v54, -inf  ;;  %v517_v60 = vsel %vm504_vm3, %v2406_v30, -inf }
  0x80   : > { %v2439_v0 = vld [vmem:[%s1832_s17 + $0x5c] sm:$0x1]  ;;  %v518_v42 = vsel %vm504_vm3, %v2409_v47, -inf  ;;  %v519_v9 = vsel %vm504_vm3, %v2412_v59, -inf  ;;  %v520_v10 = vsel %vm504_vm3, %v2415_v20, -inf  ;;  %v529_v49 = vmax.f32 %v435_v31, %v513_v40 }
  0x81   : > { %3619 = vst [vmem:[#allocation25_spill] sm:$0xff] %v2439_v0  ;;  %v2454_v51 = vld [vmem:[%s1832_s17 + $0x64] sm:$0x1]  ;;  %v530_v61 = vmax.f32 %v436_v56, %v514_v53  ;;  %v531_v13 = vmax.f32 %v437_v37, %v515_v41  ;;  %v532_v15 = vmax.f32 %v438_v48, %v516_v8  ;;  %v2457_v18 = vld [vmem:[%s1832_s17 + $0x6c] sm:$0x1]  ;;  %v533_v54 = vmax.f32 %v439_v11, %v517_v60 }
  0x82   : > { %3620 = vst [vmem:[#allocation26_spill] sm:$0xff] %v2454_v51  ;;  %3621 = vst [vmem:[#allocation27_spill] sm:$0xff] %v2457_v18  ;;  %v2460_v47 = vld [vmem:[%s1832_s17 + $0x74] sm:$0x1]  ;;  %v2463_v30 = vld [vmem:[%s1832_s17 + $0x7c] sm:$0x1]  ;;  %v534_v59 = vmax.f32 %v440_v5, %v518_v42  ;;  %v535_v7 = vmax.f32 %v441_v62, %v519_v9  ;;  %v536_v1 = vmax.f32 %v442_v34, %v520_v10 }
  0x83   : > { %3622 = vst [vmem:[#allocation28_spill] sm:$0xff] %v2460_v47  ;;  %3623 = vst [vmem:[#allocation29_spill] sm:$0xff] %v2463_v30  ;;  %v2466_v38 = vld [vmem:[%s1832_s17 + $0x45] sm:$0x1]  ;;  %v2469_v20 = vld [vmem:[%s1832_s17 + $0x4d] sm:$0x1] }
  0x84   : > { %3624 = vst [vmem:[#allocation30_spill] sm:$0xff] %v2469_v20  ;;  %v2472_v31 = vld [vmem:[%s1832_s17 + $0x55] sm:$0x1]  ;;  %v607_v48 = vsel %vm598_vm4, %v2418_v57, -inf  ;;  %v608_v11 = vsel %vm598_vm4, %v2421_v58, -inf  ;;  %v609_v62 = vsel %vm598_vm4, %v2424_v39, -inf }
  0x85   : > { %3625 = vst [vmem:[#allocation31_spill] sm:$0xff] %v2472_v31  ;;  %v610_v5 = vsel %vm598_vm4, %v2439_v0, -inf  ;;  %v2487_v56 = vld [vmem:[%s1832_s17 + $0x5d] sm:$0x1]  ;;  %v611_v37 = vsel %vm598_vm4, %v2454_v51, -inf  ;;  %v612_v34 = vsel %vm598_vm4, %v2457_v18, -inf  ;;  %v623_v8 = vmax.f32 %v529_v49, %v607_v48 }
  0x86   : > { %3626 = vst [vmem:[#allocation32_spill] sm:$0xff] %v2487_v56  ;;  %v613_v40 = vsel %vm598_vm4, %v2460_v47, -inf  ;;  %v614_v53 = vsel %vm598_vm4, %v2463_v30, -inf  ;;  %v2502_v41 = vld [vmem:[%s1832_s17 + $0x65] sm:$0x1]  ;;  %v624_v60 = vmax.f32 %v530_v61, %v608_v11  ;;  %v625_v42 = vmax.f32 %v531_v13, %v609_v62 }
  0x87   : > { %3627 = vst [vmem:[#allocation33_spill] sm:$0xff] %v2502_v41  ;;  %v626_v9 = vmax.f32 %v532_v15, %v610_v5  ;;  %v2505_v10 = vld [vmem:[%s1832_s17 + $0x6d] sm:$0x1]  ;;  %v2508_v18 = vld [vmem:[%s1832_s17 + $0x75] sm:$0x1]  ;;  %v627_v0 = vmax.f32 %v533_v54, %v611_v37  ;;  %v628_v47 = vmax.f32 %v534_v59, %v612_v34  ;;  %v629_v39 = vmax.f32 %v535_v7, %v613_v40 }
  0x88   : > { %3628 = vst [vmem:[#allocation34_spill] sm:$0xff] %v2505_v10  ;;  %3629 = vst [vmem:[#allocation35_spill] sm:$0xff] %v2508_v18  ;;  %v2511_v51 = vld [vmem:[%s1832_s17 + $0x7d] sm:$0x1]  ;;  %v630_v33 = vmax.f32 %v536_v1, %v614_v53  ;;  %v2514_v58 = vld [vmem:[%s1832_s17 + $0x46] sm:$0x1] }
  0x89   : > { %3630 = vst [vmem:[#allocation36_spill] sm:$0xff] %v2511_v51  ;;  %v2517_v30 = vld [vmem:[%s1832_s17 + $0x4e] sm:$0x1]  ;;  %v2520_v49 = vld [vmem:[%s1832_s17 + $0x56] sm:$0x1]  ;;  %v701_v61 = vsel %vm692_vm5, %v2466_v38, -inf }
  0x8a   : > { %3631 = vst [vmem:[#allocation37_spill] sm:$0xff] %v2517_v30  ;;  %3632 = vst [vmem:[#allocation38_spill] sm:$0xff] %v2520_v49  ;;  %v702_v54 = vsel %vm692_vm5, %v2469_v20, -inf  ;;  %v703_v59 = vsel %vm692_vm5, %v2472_v31, -inf  ;;  %v704_v7 = vsel %vm692_vm5, %v2487_v56, -inf  ;;  %v705_v15 = vsel %vm692_vm5, %v2502_v41, -inf }
  0x8b   : > { %v2535_v13 = vld [vmem:[%s1832_s17 + $0x5e] sm:$0x1]  ;;  %v706_v1 = vsel %vm692_vm5, %v2505_v10, -inf  ;;  %v707_v48 = vsel %vm692_vm5, %v2508_v18, -inf  ;;  %v708_v11 = vsel %vm692_vm5, %v2511_v51, -inf  ;;  %v717_v5 = vmax.f32 %v623_v8, %v701_v61 }
  0x8c   : > { %3633 = vst [vmem:[#allocation39_spill] sm:$0xff] %v2535_v13  ;;  %v2550_v62 = vld [vmem:[%s1832_s17 + $0x66] sm:$0x1]  ;;  %v718_v37 = vmax.f32 %v624_v60, %v702_v54  ;;  %v719_v34 = vmax.f32 %v625_v42, %v703_v59  ;;  %v720_v40 = vmax.f32 %v626_v9, %v704_v7  ;;  %v2553_v53 = vld [vmem:[%s1832_s17 + $0x6e] sm:$0x1]  ;;  %v721_v56 = vmax.f32 %v627_v0, %v705_v15 }
  0x8d   : > { %3634 = vst [vmem:[#allocation40_spill] sm:$0xff] %v2550_v62  ;;  %3635 = vst [vmem:[#allocation41_spill] sm:$0xff] %v2553_v53  ;;  %v2556_v10 = vld [vmem:[%s1832_s17 + $0x76] sm:$0x1]  ;;  %v2559_v41 = vld [vmem:[%s1832_s17 + $0x7e] sm:$0x1]  ;;  %v722_v18 = vmax.f32 %v628_v47, %v706_v1  ;;  %v723_v31 = vmax.f32 %v629_v39, %v707_v48  ;;  %v724_v63 = vmax.f32 %v630_v33, %v708_v11 }
  0x8e   : > { %3636 = vst [vmem:[#allocation42_spill] sm:$0xff] %v2556_v10  ;;  %v2562_v20 = vld [vmem:[%s1832_s17 + $0x47] sm:$0x1]  ;;  %v2565_v51 = vld [vmem:[%s1832_s17 + $0x4f] sm:$0x1]  ;;  %v795_v60 = vsel %vm786_vm6, %v2514_v58, -inf }
  0x8f   : > { %v2568_v8 = vld [vmem:[%s1832_s17 + $0x57] sm:$0x1]  ;;  %v796_v0 = vsel %vm786_vm6, %v2517_v30, -inf  ;;  %v797_v47 = vsel %vm786_vm6, %v2520_v49, -inf  ;;  %v798_v39 = vsel %vm786_vm6, %v2535_v13, -inf  ;;  %v799_v9 = vsel %vm786_vm6, %v2550_v62, -inf }
  0x90   : > { %3637 = vst [vmem:[#allocation43_spill] sm:$0xff] %v2568_v8  ;;  %v2583_v42 = vld [vmem:[%s1832_s17 + $0x5f] sm:$0x1]  ;;  %v800_v33 = vsel %vm786_vm6, %v2553_v53, -inf  ;;  %v801_v61 = vsel %vm786_vm6, %v2556_v10, -inf  ;;  %v802_v54 = vsel %vm786_vm6, %v2559_v41, -inf  ;;  %v811_v7 = vmax.f32 %v717_v5, %v795_v60 }
  0x91   : > { %3638 = vst [vmem:[#allocation44_spill] sm:$0xff] %v2583_v42  ;;  %v2598_v59 = vld [vmem:[%s1832_s17 + $0x67] sm:$0x1]  ;;  %v812_v15 = vmax.f32 %v718_v37, %v796_v0  ;;  %v813_v1 = vmax.f32 %v719_v34, %v797_v47  ;;  %v814_v48 = vmax.f32 %v720_v40, %v798_v39  ;;  %v2601_v11 = vld [vmem:[%s1832_s17 + $0x6f] sm:$0x1]  ;;  %v815_v53 = vmax.f32 %v721_v56, %v799_v9 }
  0x92   : > { %3639 = vst [vmem:[#allocation45_spill] sm:$0xff] %v2598_v59  ;;  %3640 = vst [vmem:[#allocation46_spill] sm:$0xff] %v2601_v11  ;;  %v2604_v62 = vld [vmem:[%s1832_s17 + $0x77] sm:$0x1]  ;;  %v2607_v13 = vld [vmem:[%s1832_s17 + $0x7f] sm:$0x1]  ;;  %v816_v49 = vmax.f32 %v722_v18, %v800_v33  ;;  %v817_v30 = vmax.f32 %v723_v31, %v801_v61  ;;  %v818_v10 = vmax.f32 %v724_v63, %v802_v54 }
  0x93   : > { %3641 = vst [vmem:[#allocation47_spill] sm:$0xff] %v2604_v62  ;;  %3642 = vst [vmem:[#allocation48_spill] sm:$0xff] %v2607_v13  ;;  %v889_v4 = vsel %vm880_vm9, %v2562_v20, -inf  ;;  %v890_v5 = vsel %vm880_vm9, %v2565_v51, -inf  ;;  %v891_v37 = vsel %vm880_vm9, %v2568_v8, -inf  ;;  %v892_v34 = vsel %vm880_vm9, %v2583_v42, -inf }
  0x94   : > { %v893_v18 = vsel %vm880_vm9, %v2598_v59, -inf  ;;  %v894_v31 = vsel %vm880_vm9, %v2601_v11, -inf  ;;  %v895_v56 = vsel %vm880_vm9, %v2604_v62, -inf  ;;  %v896_v40 = vsel %vm880_vm9, %v2607_v13, -inf  ;;  %s1614_s14 = scalar_select %p2778_p7, 0, 1 }
  0x95   : > { %v2633_v63 = vmax.f32 %v811_v7, %v889_v4  ;;  %v2635_v60 = vmax.f32 %v812_v15, %v890_v5  ;;  %v2637_v0 = vmax.f32 %v813_v1, %v891_v37  ;;  %v2639_v47 = vmax.f32 %v814_v48, %v892_v34  ;;  %s1616_s18 = scalar_select %p2820_p12, 0, 1 }
  0x96   : > { %v2641_v39 = vmax.f32 %v815_v53, %v893_v18  ;;  %v2643_v9 = vmax.f32 %v816_v49, %v894_v31  ;;  %v2645_v33 = vmax.f32 %v817_v30, %v895_v56  ;;  %v2647_v61 = vmax.f32 %v818_v10, %v896_v40  ;;  %s1618_s21 = scalar_select %p2840_p3, 0, 1 }
  0x97   : > { %v1311_v35 = vadd.f32 %v2210_v21, %v2633_v63  ;;  %v1312_v54 = vadd.f32 %v2210_v21, %v2635_v60  ;;  %v1313_v7 = vadd.f32 %v2210_v21, %v2637_v0  ;;  %v1314_v15 = vadd.f32 %v2210_v21, %v2639_v47  ;;  %p742_p7 = scmp.gt.s32.totalorder %s2700_s11, 6 }
  0x98   : > { %v1315_v49 = vadd.f32 %v2210_v21, %v2641_v39  ;;  %v1316_v30 = vadd.f32 %v2210_v21, %v2643_v9  ;;  %v1317_v10 = vadd.f32 %v2210_v21, %v2645_v33  ;;  %v1318_v53 = vadd.f32 %v2210_v21, %v2647_v61  ;;  %s1620_s22 = scalar_select %p2865_p4, 0, 1 }
  0x99   : > { %v1349_v1 = vrot.slane %v1312_v54, 7  ;;  %v1351_v48 = vrot.slane %v1313_v7, 6  ;;  %v1353_v4 = vrot.slane %v1314_v15, 5  ;;  %v1238_v5 = vadd.f32 %v2245_v44, %v2633_v63  ;;  %s1622_s23 = scalar_select %p2883_p5, 0, 1 }
  0x9a   : > { %v1355_v37 = vrot.slane %v1315_v49, 4  ;;  %v1357_v34 = vrot.slane %v1316_v30, 3  ;;  %v1359_v18 = vrot.slane %v1317_v10, 2  ;;  %v1361_v31 = vrot.slane %v1318_v53, 1  ;;  %p2961_p10 = pnand %p742_p7, %p741_p6 }
  0x9b   : > { %v1350_v56 = vsel %vm951_vm7, %v1349_v1, %v1311_v35  ;;  %v1239_v40 = vadd.f32 %v2245_v44, %v2635_v60  ;;  %v1240_v13 = vadd.f32 %v2245_v44, %v2637_v0  ;;  %v1241_v21 = vadd.f32 %v2245_v44, %v2639_v47  ;;  %v2685_v1 = vld [vmem:[%s2172_s9 + $0x2] ss:$0 sm:$0xff]  ;;  %s1626_s0 = scalar_select %p2981_p11, 0, 1 }
  0x9c   : > { %v1352_v54 = vsel %vm954_vm8, %v1351_v48, %v1350_v56  ;;  %v1242_v7 = vadd.f32 %v2245_v44, %v2641_v39  ;;  %v1243_v15 = vadd.f32 %v2245_v44, %v2643_v9  ;;  %v1244_v35 = vadd.f32 %v2245_v44, %v2645_v33  ;;  %s1624_s26 = scalar_select %p2961_p10, 0, 1 }
  0x9d   : > { %v1354_v49 = vsel %vm957_vm10, %v1353_v4, %v1352_v54  ;;  %v1245_v30 = vadd.f32 %v2245_v44, %v2647_v61  ;;  %v1276_v10 = vrot.slane %v1239_v40, 7  ;;  %v1278_v53 = vrot.slane %v1240_v13, 6 }
  0x9e   : > { %v1356_v48 = vsel %vm960_vm11, %v1355_v37, %v1354_v49  ;;  %v1280_v56 = vrot.slane %v1241_v21, 5  ;;  %v1282_v62 = vrot.slane %v1242_v7, 4  ;;  %v1284_v11 = vrot.slane %v1243_v15, 3 }
  0x9f   : > { %v1358_v59 = vsel %vm963_vm12, %v1357_v34, %v1356_v48  ;;  %v1277_v42 = vsel %vm951_vm7, %v1276_v10, %v1238_v5  ;;  %v1286_v8 = vrot.slane %v1244_v35, 2  ;;  %v1288_v4 = vrot.slane %v1245_v30, 1 }
  0xa0   : > { %v1360_v54 = vsel %vm966_vm13, %v1359_v18, %v1358_v59  ;;  %v1279_v44 = vsel %vm954_vm8, %v1278_v53, %v1277_v42  ;;  %v1384_v13 = vadd.f32 %v2685_v1, %v2633_v63  ;;  %v1385_v40 = vadd.f32 %v2685_v1, %v2635_v60 }
  0xa1   : > { %v1362_v37 = vsel %vm969_vm14, %v1361_v31, %v1360_v54  ;;  %v1281_v5 = vsel %vm957_vm10, %v1280_v56, %v1279_v44  ;;  %v1386_v34 = vadd.f32 %v2685_v1, %v2637_v0  ;;  %v1387_v42 = vadd.f32 %v2685_v1, %v2639_v47 }
  0xa2   : > { %v1368_v59 = vsel %vm987_vm15, %v1362_v37, -inf  ;;  %v1283_v18 = vsel %vm960_vm11, %v1282_v62, %v1281_v5  ;;  %v1388_v21 = vadd.f32 %v2685_v1, %v2641_v39  ;;  %v1389_v7 = vadd.f32 %v2685_v1, %v2643_v9 }
  0xa3   : > { %1369 = vmax.xlane.f32.xlu1 %v1368_v59  ;;  %v1285_v31 = vsel %vm963_vm12, %v1284_v11, %v1283_v18  ;;  %v1390_v15 = vadd.f32 %v2685_v1, %v2645_v33  ;;  %v1391_v35 = vadd.f32 %v2685_v1, %v2647_v61  ;;  %v1422_v49 = vrot.slane %v1385_v40, 7 }
  0xa4   : > { %v1287_v30 = vsel %vm966_vm13, %v1286_v8, %v1285_v31  ;;  %v1424_v10 = vrot.slane %v1386_v34, 6  ;;  %v1426_v62 = vrot.slane %v1387_v42, 5  ;;  %v1428_v53 = vrot.slane %v1388_v21, 4 }
  0xa5   : > { %v1289_v48 = vsel %vm969_vm14, %v1288_v4, %v1287_v30  ;;  %v1423_v56 = vsel %vm951_vm7, %v1422_v49, %v1384_v13  ;;  %v1430_v54 = vrot.slane %v1389_v7, 3  ;;  %v1432_v11 = vrot.slane %v1390_v15, 2  ;;  %v2746_v49 = vld [vmem:[%s2172_s9 + $0x3] ss:$0 sm:$0xff] }
  0xa6   : > { %v1295_v44 = vsel %vm987_vm15, %v1289_v48, -inf  ;;  %v1425_v37 = vsel %vm954_vm8, %v1424_v10, %v1423_v56  ;;  %v1434_v5 = vrot.slane %v1391_v35, 1  ;;  %v1376_v40 = vadd.f32 %v2685_v1, %v2212_v22 }
  0xa7   : > { %1296 = vmax.xlane.f32.xlu0 %v1295_v44  ;;  %v1427_v8 = vsel %vm957_vm10, %v1426_v62, %v1425_v37  ;;  %v1377_v4 = vadd.f32 %v2685_v1, %v2214_v23  ;;  %v1378_v13 = vadd.f32 %v2685_v1, %v2216_v24  ;;  %v1379_v34 = vadd.f32 %v2685_v1, %v2218_v25 }
  0xa8   : > { %v1429_v42 = vsel %vm960_vm11, %v1428_v53, %v1427_v8  ;;  %v1380_v59 = vadd.f32 %v2685_v1, %v2220_v26  ;;  %v1381_v18 = vadd.f32 %v2685_v1, %v2222_v27  ;;  %v1382_v21 = vadd.f32 %v2685_v1, %v2224_v28 }
  0xa9   : > { %v1431_v7 = vsel %vm963_vm12, %v1430_v54, %v1429_v42  ;;  %v1383_v31 = vadd.f32 %v2685_v1, %v2226_v29  ;;  %v1408_v15 = vrot.slane %v1377_v4, 7  ;;  %v1410_v35 = vrot.slane %v1378_v13, 6 }
  0xaa   : > { %v1433_v30 = vsel %vm966_vm13, %v1432_v11, %v1431_v7  ;;  %v1412_v10 = vrot.slane %v1379_v34, 5  ;;  %v1414_v62 = vrot.slane %v1380_v59, 4  ;;  %v1416_v53 = vrot.slane %v1381_v18, 3 }
  0xab   : > { %v1435_v48 = vsel %vm969_vm14, %v1434_v5, %v1433_v30  ;;  %v1409_v56 = vsel %vm951_vm7, %v1408_v15, %v1376_v40  ;;  %v1418_v54 = vrot.slane %v1382_v21, 2  ;;  %v1420_v44 = vrot.slane %v1383_v31, 1 }
  0xac   : > { %v1441_v37 = vsel %vm987_vm15, %v1435_v48, -inf  ;;  %v1411_v8 = vsel %vm954_vm8, %v1410_v35, %v1409_v56  ;;  %v1457_v4 = vadd.f32 %v2746_v49, %v2633_v63  ;;  %v1458_v11 = vadd.f32 %v2746_v49, %v2635_v60 }
  0xad   : > { %1442 = vmax.xlane.f32.xlu1 %v1441_v37  ;;  %v1413_v5 = vsel %vm957_vm10, %v1412_v10, %v1411_v8  ;;  %v1459_v40 = vadd.f32 %v2746_v49, %v2637_v0  ;;  %v1460_v63 = vadd.f32 %v2746_v49, %v2639_v47  ;;  %v1461_v60 = vadd.f32 %v2746_v49, %v2641_v39 }
  0xae   : > { %v1415_v13 = vsel %vm960_vm11, %v1414_v62, %v1413_v5  ;;  %v1462_v34 = vadd.f32 %v2746_v49, %v2643_v9  ;;  %v1463_v0 = vadd.f32 %v2746_v49, %v2645_v33  ;;  %v1464_v47 = vadd.f32 %v2746_v49, %v2647_v61 }
  0xaf   : > { %v1417_v39 = vsel %vm963_vm12, %v1416_v53, %v1415_v13  ;;  %v1495_v42 = vrot.slane %v1458_v11, 7  ;;  %v1497_v59 = vrot.slane %v1459_v40, 6  ;;  %v1499_v18 = vrot.slane %v1460_v63, 5 }
  0xb0   : > { %v1419_v21 = vsel %vm966_vm13, %v1418_v54, %v1417_v39  ;;  %v1501_v7 = vrot.slane %v1461_v60, 4  ;;  %v1503_v9 = vrot.slane %v1462_v34, 3  ;;  %v1505_v31 = vrot.slane %v1463_v0, 2 }
  0xb1   : > { %v1421_v33 = vsel %vm969_vm14, %v1420_v44, %v1419_v21  ;;  %v1496_v61 = vsel %vm951_vm7, %v1495_v42, %v1457_v4  ;;  %v1507_v15 = vrot.slane %v1464_v47, 1  ;;  %v1449_v35 = vadd.f32 %v2746_v49, %v2212_v22 }
  0xb2   : > { %v1438_v30 = vsel %vm987_vm15, %v1421_v33, -inf  ;;  %v1498_v10 = vsel %vm954_vm8, %v1497_v59, %v1496_v61  ;;  %v1450_v62 = vadd.f32 %v2746_v49, %v2214_v23  ;;  %v1451_v53 = vadd.f32 %v2746_v49, %v2216_v24  ;;  %v3649_v33 = vld [vmem:[#allocation7_spill] sm:$0xff] }
  0xb3   : > { %1439 = vmax.xlane.f32.xlu0 %v1438_v30  ;;  %v1500_v22 = vsel %vm957_vm10, %v1499_v18, %v1498_v10  ;;  %v1452_v48 = vadd.f32 %v2746_v49, %v2218_v25  ;;  %v1453_v56 = vadd.f32 %v2746_v49, %v2220_v26  ;;  %v1454_v54 = vadd.f32 %v2746_v49, %v2222_v27 }
  0xb4   : > { %v1502_v23 = vsel %vm960_vm11, %v1501_v7, %v1500_v22  ;;  %v1455_v24 = vadd.f32 %v2746_v49, %v2224_v28  ;;  %v1456_v25 = vadd.f32 %v2746_v49, %v2226_v29  ;;  %v1481_v26 = vrot.slane %v1450_v62, 7 }
  0xb5   : > { %v1504_v27 = vsel %vm963_vm12, %v1503_v9, %v1502_v23  ;;  %v1483_v44 = vrot.slane %v1451_v53, 6  ;;  %v1485_v37 = vrot.slane %v1452_v48, 5  ;;  %v1487_v8 = vrot.slane %v1453_v56, 4  ;;  %v3651_v56 = vld [vmem:[#allocation8_spill] sm:$0xff]  ;;  %v3652_v23 = vld [vmem:[#allocation9_spill] sm:$0xff] }
  0xb6   : > { %v1506_v28 = vsel %vm966_vm13, %v1505_v31, %v1504_v27  ;;  %v1482_v4 = vsel %vm951_vm7, %v1481_v26, %v1449_v35  ;;  %v1489_v29 = vrot.slane %v1454_v54, 3  ;;  %v1491_v11 = vrot.slane %v1455_v24, 2  ;;  %v3654_v27 = vld [vmem:[#allocation11_spill] sm:$0xff] }
  0xb7   : > { %v1508_v5 = vsel %vm969_vm14, %v1507_v15, %v1506_v28  ;;  %v1484_v40 = vsel %vm954_vm8, %v1483_v44, %v1482_v4  ;;  %v1493_v63 = vrot.slane %v1456_v25, 1  ;;  %v2849_v60 = vstv %s1612_s13  ;;  %v3653_v25 = vld [vmem:[#allocation10_spill] sm:$0xff]  ;;  %v3657_v28 = vld [vmem:[#allocation13_spill] sm:$0xff] }
  0xb8   : > { %v1514_v13 = vsel %vm987_vm15, %v1508_v5, -inf  ;;  %v1486_v34 = vsel %vm957_vm10, %v1485_v37, %v1484_v40  ;;  %vm212_vm0 = vcmp.eq.s32.totalorder %v2849_v60, 1  ;;  %v2859_v0 = vstv %s1614_s14  ;;  %v3656_v37 = vld [vmem:[#allocation12_spill] sm:$0xff]  ;;  %v3659_v5 = vld [vmem:[#allocation15_spill] sm:$0xff] }
  0xb9   : > { %1515 = vmax.xlane.f32.xlu1 %v1514_v13  ;;  %v1488_v47 = vsel %vm960_vm11, %v1487_v8, %v1486_v34  ;;  %v221_v39 = vsel %vm212_vm0, %v2060_v2, -inf  ;;  %v222_v42 = vsel %vm212_vm0, %v2097_v14, -inf  ;;  %v223_v59 = vsel %vm212_vm0, %v2108_v19, -inf }
  0xba   : > { %v1490_v18 = vsel %vm963_vm12, %v1489_v29, %v1488_v47  ;;  %v224_v2 = vsel %vm212_vm0, %v2130_v36, -inf  ;;  %v225_v14 = vsel %vm212_vm0, %v2153_v45, -inf  ;;  %v226_v19 = vsel %vm212_vm0, %v2164_v50, -inf  ;;  %v3658_v29 = vld [vmem:[#allocation14_spill] sm:$0xff] }
  0xbb   : > { %v1492_v21 = vsel %vm966_vm13, %v1491_v11, %v1490_v18  ;;  %v227_v7 = vsel %vm212_vm0, %v2264_v3, -inf  ;;  %v228_v36 = vsel %vm212_vm0, %v2267_v6, -inf  ;;  %vm277_vm1 = vcmp.eq.s32.totalorder %v2859_v0, 1 }
  0xbc   : > { %v1494_v45 = vsel %vm969_vm14, %v1493_v63, %v1492_v21  ;;  %v286_v50 = vsel %vm277_vm1, %v2273_v16, -inf  ;;  %v287_v3 = vsel %vm277_vm1, %v2276_v17, -inf  ;;  %v288_v6 = vsel %vm277_vm1, %v2280_v32, -inf  ;;  %v3661_v21 = vld [vmem:[#allocation17_spill] sm:$0xff] }
  0xbd   : > { %v1511_v9 = vsel %vm987_vm15, %v1494_v45, -inf  ;;  %v289_v31 = vsel %vm277_vm1, %v2285_v43, -inf  ;;  %v290_v16 = vsel %vm277_vm1, %v2288_v46, -inf  ;;  %v291_v17 = vsel %vm277_vm1, %v2299_v52, -inf }
  0xbe   : > { %1512 = vmax.xlane.f32.xlu0 %v1511_v9  ;;  %v292_v32 = vsel %vm277_vm1, %v2302_v55, -inf  ;;  %v293_v43 = vsel %vm277_vm1, %v3649_v33, -inf  ;;  %v302_v61 = vmax.f32 %v221_v39, %v286_v50  ;;  %v303_v46 = vmax.f32 %v222_v42, %v287_v3  ;;  %v3663_v50 = vld [vmem:[#allocation19_spill] sm:$0xff]  ;;  %v3665_v9 = vld [vmem:[#allocation21_spill] sm:$0xff] }
  0xbf   : > { %v304_v15 = vmax.f32 %v223_v59, %v288_v6  ;;  %v305_v52 = vmax.f32 %v224_v2, %v289_v31  ;;  %v306_v35 = vmax.f32 %v225_v14, %v290_v16  ;;  %v307_v30 = vmax.f32 %v226_v19, %v291_v17  ;;  %v3660_v14 = vld [vmem:[#allocation16_spill] sm:$0xff]  ;;  %v3666_v16 = vld [vmem:[#allocation22_spill] sm:$0xff] }
  0xc0   : > { %v308_v10 = vmax.f32 %v227_v7, %v292_v32  ;;  %v309_v62 = vmax.f32 %v228_v36, %v293_v43  ;;  %v2944_v55 = vstv %s1616_s18  ;;  %v2949_v53 = vstv %s1618_s21  ;;  %v3662_v36 = vld [vmem:[#allocation18_spill] sm:$0xff]  ;;  %v3664_v6 = vld [vmem:[#allocation20_spill] sm:$0xff] }
  0xc1   : > { %vm371_vm2 = vcmp.eq.s32.totalorder %v2944_v55, 1  ;;  %vm465_vm3 = vcmp.eq.s32.totalorder %v2949_v53, 1  ;;  %v2953_v22 = vstv %s1620_s22  ;;  %v2955_v48 = vstv %s1622_s23 }
  0xc2   : > { %v380_v54 = vsel %vm371_vm2, %v3651_v56, -inf  ;;  %v381_v24 = vsel %vm371_vm2, %v3652_v23, -inf  ;;  %v382_v26 = vsel %vm371_vm2, %v3653_v25, -inf  ;;  %v383_v44 = vsel %vm371_vm2, %v3654_v27, -inf  ;;  %v3667_v56 = vld [vmem:[#allocation23_spill] sm:$0xff]  ;;  %v3668_v23 = vld [vmem:[#allocation24_spill] sm:$0xff] }
  0xc3   : > { %v384_v8 = vsel %vm371_vm2, %v3656_v37, -inf  ;;  %v385_v4 = vsel %vm371_vm2, %v3657_v28, -inf  ;;  %v386_v11 = vsel %vm371_vm2, %v3658_v29, -inf  ;;  %v387_v40 = vsel %vm371_vm2, %v3659_v5, -inf  ;;  %v3669_v25 = vld [vmem:[#allocation25_spill] sm:$0xff]  ;;  %v3670_v27 = vld [vmem:[#allocation26_spill] sm:$0xff] }
  0xc4   : > { %v396_v63 = vmax.f32 %v302_v61, %v380_v54  ;;  %v397_v13 = vmax.f32 %v303_v46, %v381_v24  ;;  %v398_v34 = vmax.f32 %v304_v15, %v382_v26  ;;  %v399_v47 = vmax.f32 %v305_v52, %v383_v44  ;;  %v3671_v37 = vld [vmem:[#allocation27_spill] sm:$0xff] }
  0xc5   : > { %v400_v39 = vmax.f32 %v306_v35, %v384_v8  ;;  %v401_v42 = vmax.f32 %v307_v30, %v385_v4  ;;  %v402_v59 = vmax.f32 %v308_v10, %v386_v11  ;;  %v403_v18 = vmax.f32 %v309_v62, %v387_v40  ;;  %v3672_v8 = vld [vmem:[#allocation28_spill] sm:$0xff]  ;;  %v3673_v4 = vld [vmem:[#allocation29_spill] sm:$0xff] }
  0xc6   : > { %v474_v2 = vsel %vm465_vm3, %v2370_v12, -inf  ;;  %v475_v19 = vsel %vm465_vm3, %v3660_v14, -inf  ;;  %v476_v7 = vsel %vm465_vm3, %v3661_v21, -inf  ;;  %v477_v45 = vsel %vm465_vm3, %v3662_v36, -inf }
  0xc7   : > { %v478_v3 = vsel %vm465_vm3, %v3663_v50, -inf  ;;  %v479_v12 = vsel %vm465_vm3, %v3664_v6, -inf  ;;  %v480_v31 = vsel %vm465_vm3, %v3665_v9, -inf  ;;  %v481_v17 = vsel %vm465_vm3, %v3666_v16, -inf  ;;  %v3679_v50 = vld [vmem:[#allocation35_spill] sm:$0xff]  ;;  %v3680_v6 = vld [vmem:[#allocation36_spill] sm:$0xff] }
  0xc8   : > { %v490_v32 = vmax.f32 %v396_v63, %v474_v2  ;;  %v491_v33 = vmax.f32 %v397_v13, %v475_v19  ;;  %v492_v43 = vmax.f32 %v398_v34, %v476_v7  ;;  %v493_v61 = vmax.f32 %v399_v47, %v477_v45  ;;  %v3675_v2 = vld [vmem:[#allocation31_spill] sm:$0xff]  ;;  %v3676_v19 = vld [vmem:[#allocation32_spill] sm:$0xff]  ;;  %v3677_v7 = vld [vmem:[#allocation33_spill] sm:$0xff] }
  0xc9   : > { %v494_v46 = vmax.f32 %v400_v39, %v478_v3  ;;  %v495_v15 = vmax.f32 %v401_v42, %v479_v12  ;;  %v496_v52 = vmax.f32 %v402_v59, %v480_v31  ;;  %v497_v35 = vmax.f32 %v403_v18, %v481_v17  ;;  %v3674_v59 = vld [vmem:[#allocation30_spill] sm:$0xff] }
  0xca   : > { %vm559_vm4 = vcmp.eq.s32.totalorder %v2953_v22, 1  ;;  %vm653_vm5 = vcmp.eq.s32.totalorder %v2955_v48, 1  ;;  %v3027_v30 = vstv %s1624_s26  ;;  %v3029_v10 = vstv %s1626_s0  ;;  %v3678_v45 = vld [vmem:[#allocation34_spill] sm:$0xff] }
  0xcb   : > { %v568_v62 = vsel %vm559_vm4, %v2418_v57, -inf  ;;  %v569_v54 = vsel %vm559_vm4, %v3667_v56, -inf  ;;  %v570_v24 = vsel %vm559_vm4, %v3668_v23, -inf  ;;  %v571_v26 = vsel %vm559_vm4, %v3669_v25, -inf  ;;  %v3681_v56 = vld [vmem:[#allocation37_spill] sm:$0xff]  ;;  %v3682_v23 = vld [vmem:[#allocation38_spill] sm:$0xff] }
  0xcc   : > { %v572_v44 = vsel %vm559_vm4, %v3670_v27, -inf  ;;  %v573_v57 = vsel %vm559_vm4, %v3671_v37, -inf  ;;  %v574_v28 = vsel %vm559_vm4, %v3672_v8, -inf  ;;  %v575_v29 = vsel %vm559_vm4, %v3673_v4, -inf  ;;  %v3683_v25 = vld [vmem:[#allocation39_spill] sm:$0xff]  ;;  %v3684_v27 = vld [vmem:[#allocation40_spill] sm:$0xff] }
  0xcd   : > { %v584_v11 = vmax.f32 %v490_v32, %v568_v62  ;;  %v585_v5 = vmax.f32 %v491_v33, %v569_v54  ;;  %v586_v40 = vmax.f32 %v492_v43, %v570_v24  ;;  %v587_v63 = vmax.f32 %v493_v61, %v571_v26  ;;  %v3685_v37 = vld [vmem:[#allocation41_spill] sm:$0xff] }
  0xce   : > { %v588_v13 = vmax.f32 %v494_v46, %v572_v44  ;;  %v589_v34 = vmax.f32 %v495_v15, %v573_v57  ;;  %v590_v47 = vmax.f32 %v496_v52, %v574_v28  ;;  %v591_v39 = vmax.f32 %v497_v35, %v575_v29  ;;  %v1651_v46 = vld [vmem:[%s1832_s17] sm:$0x1]  ;;  %v1652_v52 = vld [vmem:[%s1832_s17 + $0x8] sm:$0x1]  ;;  %v3686_v57 = vld [vmem:[#allocation42_spill] sm:$0xff] }
  0xcf   : > { %v662_v42 = vsel %vm653_vm5, %v2466_v38, -inf  ;;  %v663_v18 = vsel %vm653_vm5, %v3674_v59, -inf  ;;  %v664_v14 = vsel %vm653_vm5, %v3675_v2, -inf  ;;  %v665_v21 = vsel %vm653_vm5, %v3676_v19, -inf  ;;  %v3688_v59 = vld [vmem:[#allocation44_spill] sm:$0xff]  ;;  %v3689_v2 = vld [vmem:[#allocation45_spill] sm:$0xff] }
  0xd0   : > { %v666_v36 = vsel %vm653_vm5, %v3677_v7, -inf  ;;  %v667_v38 = vsel %vm653_vm5, %v3678_v45, -inf  ;;  %v668_v3 = vsel %vm653_vm5, %v3679_v50, -inf  ;;  %v669_v12 = vsel %vm653_vm5, %v3680_v6, -inf  ;;  %v3690_v19 = vld [vmem:[#allocation46_spill] sm:$0xff]  ;;  %v3692_v7 = vld [vmem:[#allocation48_spill] sm:$0xff] }
  0xd1   : > { %v678_v9 = vmax.f32 %v584_v11, %v662_v42  ;;  %v679_v31 = vmax.f32 %v585_v5, %v663_v18  ;;  %v680_v16 = vmax.f32 %v586_v40, %v664_v14  ;;  %v681_v17 = vmax.f32 %v587_v63, %v665_v21  ;;  %v3687_v42 = vld [vmem:[#allocation43_spill] sm:$0xff] }
  0xd2   : > { %v682_v32 = vmax.f32 %v588_v13, %v666_v36  ;;  %v683_v33 = vmax.f32 %v589_v34, %v667_v38  ;;  %v684_v43 = vmax.f32 %v590_v47, %v668_v3  ;;  %v685_v61 = vmax.f32 %v591_v39, %v669_v12  ;;  %v3691_v21 = vld [vmem:[#allocation47_spill] sm:$0xff] }
  0xd3   : > { %vm747_vm6 = vcmp.eq.s32.totalorder %v3027_v30, 1  ;;  %vm841_vm9 = vcmp.eq.s32.totalorder %v3029_v10, 1  ;;  %v3084_v15 = vsel %vm212_vm0, %v1651_v46, -inf  ;;  %v3089_v35 = vsel %vm212_vm0, %v1652_v52, -inf  ;;  %v3140_v45 = vld [vmem:[%s2172_s9] ss:$0 sm:$0xff] }
  0xd4   : > { %v756_v62 = vsel %vm747_vm6, %v2514_v58, -inf  ;;  %v757_v54 = vsel %vm747_vm6, %v3681_v56, -inf  ;;  %v758_v24 = vsel %vm747_vm6, %v3682_v23, -inf  ;;  %v759_v26 = vsel %vm747_vm6, %v3683_v25, -inf }
  0xd5   : > { %v760_v44 = vsel %vm747_vm6, %v3684_v27, -inf  ;;  %v761_v58 = vsel %vm747_vm6, %v3685_v37, -inf  ;;  %v762_v8 = vsel %vm747_vm6, %v3686_v57, -inf  ;;  %v763_v28 = vsel %vm747_vm6, %v2559_v41, -inf  ;;  %v1654_v57 = vld [vmem:[%s1832_s17 + $0x18] sm:$0x1] }
  0xd6   : > { %v772_v4 = vmax.f32 %v678_v9, %v756_v62  ;;  %v773_v29 = vmax.f32 %v679_v31, %v757_v54  ;;  %v774_v11 = vmax.f32 %v680_v16, %v758_v24  ;;  %v775_v5 = vmax.f32 %v681_v17, %v759_v26  ;;  %v1653_v24 = vld [vmem:[%s1832_s17 + $0x10] sm:$0x1] }
  0xd7   : > { %v776_v40 = vmax.f32 %v682_v32, %v760_v44  ;;  %v777_v63 = vmax.f32 %v683_v33, %v761_v58  ;;  %v778_v13 = vmax.f32 %v684_v43, %v762_v8  ;;  %v779_v34 = vmax.f32 %v685_v61, %v763_v28  ;;  %v1655_v28 = vld [vmem:[%s1832_s17 + $0x20] sm:$0x1] }
  0xd8   : > { %v850_v47 = vsel %vm841_vm9, %v2562_v20, -inf  ;;  %v851_v39 = vsel %vm841_vm9, %v2565_v51, -inf  ;;  %v852_v41 = vsel %vm841_vm9, %v3687_v42, -inf  ;;  %v853_v18 = vsel %vm841_vm9, %v3688_v59, -inf }
  0xd9   : > { %v854_v14 = vsel %vm841_vm9, %v3689_v2, -inf  ;;  %v855_v20 = vsel %vm841_vm9, %v3690_v19, -inf  ;;  %v856_v51 = vsel %vm841_vm9, %v3691_v21, -inf  ;;  %v857_v36 = vsel %vm841_vm9, %v3692_v7, -inf }
  0xda   : > { %v3142_v38 = vmax.f32 %v772_v4, %v850_v47  ;;  %v3144_v50 = vmax.f32 %v773_v29, %v851_v39  ;;  %v3146_v3 = vmax.f32 %v774_v11, %v852_v41  ;;  %v3148_v6 = vmax.f32 %v775_v5, %v853_v18  ;;  %v1656_v29 = vld [vmem:[%s1832_s17 + $0x28] sm:$0x1]  ;;  %v1659_v47 = vld [vmem:[%s1832_s17 + $0x1] sm:$0x1]  ;;  %v1660_v41 = vld [vmem:[%s1832_s17 + $0x9] sm:$0x1] }
  0xdb   : > { %v3150_v12 = vmax.f32 %v776_v40, %v854_v14  ;;  %v3152_v9 = vmax.f32 %v777_v63, %v855_v20  ;;  %v3154_v31 = vmax.f32 %v778_v13, %v856_v51  ;;  %v3156_v16 = vmax.f32 %v779_v34, %v857_v36  ;;  %v1657_v40 = vld [vmem:[%s1832_s17 + $0x30] sm:$0x1]  ;;  %v1658_v13 = vld [vmem:[%s1832_s17 + $0x38] sm:$0x1]  ;;  %v1661_v18 = vld [vmem:[%s1832_s17 + $0x11] sm:$0x1] }
  0xdc   : > { %v926_v17 = vadd.f32 %v3140_v45, %v3142_v38  ;;  %v927_v32 = vadd.f32 %v3140_v45, %v3144_v50  ;;  %v928_v33 = vadd.f32 %v3140_v45, %v3146_v3  ;;  %v929_v43 = vadd.f32 %v3140_v45, %v3148_v6  ;;  %v1662_v14 = vld [vmem:[%s1832_s17 + $0x19] sm:$0x1]  ;;  %v1663_v20 = vld [vmem:[%s1832_s17 + $0x21] sm:$0x1]  ;;  %v1664_v51 = vld [vmem:[%s1832_s17 + $0x29] sm:$0x1] }
  0xdd   : > { %v930_v61 = vadd.f32 %v3140_v45, %v3150_v12  ;;  %v931_v46 = vadd.f32 %v3140_v45, %v3152_v9  ;;  %v932_v52 = vadd.f32 %v3140_v45, %v3154_v31  ;;  %v933_v62 = vadd.f32 %v3140_v45, %v3156_v16  ;;  %v1665_v36 = vld [vmem:[%s1832_s17 + $0x31] sm:$0x1] }
  0xde   : > { %v971_v56 = vrot.slane %v927_v32, 7  ;;  %v973_v54 = vrot.slane %v928_v33, 6  ;;  %v975_v23 = vrot.slane %v929_v43, 5  ;;  %v3177_v25 = vsel %vm212_vm0, %v1653_v24, -inf  ;;  %v1666_v33 = vld [vmem:[%s1832_s17 + $0x39] sm:$0x1] }
  0xdf   : > { %v977_v26 = vrot.slane %v930_v61, 4  ;;  %v979_v27 = vrot.slane %v931_v46, 3  ;;  %v981_v44 = vrot.slane %v932_v52, 2  ;;  %v983_v37 = vrot.slane %v933_v62, 1 }
  0xe0   : > { %v972_v58 = vsel %vm951_vm7, %v971_v56, %v926_v17  ;;  %v216_v8 = vsel %vm212_vm0, %v1654_v57, -inf  ;;  %v217_v4 = vsel %vm212_vm0, %v1655_v28, -inf  ;;  %v218_v11 = vsel %vm212_vm0, %v1656_v29, -inf  ;;  %v1670_v57 = vld [vmem:[%s1832_s17 + $0x1a] sm:$0x1] }
  0xe1   : > { %v974_v5 = vsel %vm954_vm8, %v973_v54, %v972_v58  ;;  %v219_v63 = vsel %vm212_vm0, %v1657_v40, -inf  ;;  %v220_v34 = vsel %vm212_vm0, %v1658_v13, -inf  ;;  %v278_v39 = vsel %vm277_vm1, %v1659_v47, -inf  ;;  %v1669_v58 = vld [vmem:[%s1832_s17 + $0x12] sm:$0x1] }
  0xe2   : > { %v976_v42 = vsel %vm957_vm10, %v975_v23, %v974_v5  ;;  %v279_v59 = vsel %vm277_vm1, %v1660_v41, -inf  ;;  %v280_v2 = vsel %vm277_vm1, %v1661_v18, -inf  ;;  %v281_v60 = vsel %vm277_vm1, %v1662_v14, -inf  ;;  %v1671_v28 = vld [vmem:[%s1832_s17 + $0x22] sm:$0x1] }
  0xe3   : > { %v978_v19 = vsel %vm960_vm11, %v977_v26, %v976_v42  ;;  %v282_v21 = vsel %vm277_vm1, %v1663_v20, -inf  ;;  %v283_v7 = vsel %vm277_vm1, %v1664_v51, -inf  ;;  %v284_v17 = vsel %vm277_vm1, %v1665_v36, -inf  ;;  %v1672_v29 = vld [vmem:[%s1832_s17 + $0x2a] sm:$0x1] }
  0xe4   : > { %v980_v32 = vsel %vm963_vm12, %v979_v27, %v978_v19  ;;  %v285_v43 = vsel %vm277_vm1, %v1666_v33, -inf  ;;  %v294_v61 = vmax.f32 %v3084_v15, %v278_v39  ;;  %v295_v46 = vmax.f32 %v3089_v35, %v279_v59  ;;  %v1667_v15 = vld [vmem:[%s1832_s17 + $0x2] sm:$0x1]  ;;  %v1673_v5 = vld [vmem:[%s1832_s17 + $0x32] sm:$0x1] }
  0xe5   : > { %v982_v52 = vsel %vm966_vm13, %v981_v44, %v980_v32  ;;  %v296_v62 = vmax.f32 %v3177_v25, %v280_v2  ;;  %v297_v56 = vmax.f32 %v216_v8, %v281_v60  ;;  %v298_v54 = vmax.f32 %v217_v4, %v282_v21  ;;  %v1668_v44 = vld [vmem:[%s1832_s17 + $0xa] sm:$0x1]  ;;  %v1675_v14 = vld [vmem:[%s1832_s17 + $0x3] sm:$0x1]  ;;  %v1676_v19 = vld [vmem:[%s1832_s17 + $0xb] sm:$0x1] }
  0xe6   : > { %v984_v23 = vsel %vm969_vm14, %v983_v37, %v982_v52  ;;  %v299_v24 = vmax.f32 %v218_v11, %v283_v7  ;;  %v300_v26 = vmax.f32 %v219_v63, %v284_v17  ;;  %v301_v0 = vmax.f32 %v220_v34, %v285_v43  ;;  %v1674_v63 = vld [vmem:[%s1832_s17 + $0x3a] sm:$0x1]  ;;  %v1677_v20 = vld [vmem:[%s1832_s17 + $0x13] sm:$0x1]  ;;  %v1678_v51 = vld [vmem:[%s1832_s17 + $0x1b] sm:$0x1] }
  0xe7   : > { %v991_v27 = vsel %vm987_vm15, %v984_v23, -inf  ;;  %v372_v35 = vsel %vm371_vm2, %v1667_v15, -inf  ;;  %v373_v25 = vsel %vm371_vm2, %v1668_v44, -inf  ;;  %v374_v37 = vsel %vm371_vm2, %v1669_v58, -inf  ;;  %v1679_v36 = vld [vmem:[%s1832_s17 + $0x23] sm:$0x1] }
  0xe8   : > { %992 = vmax.xlane.f32.xlu1 %v991_v27  ;;  %v375_v8 = vsel %vm371_vm2, %v1670_v57, -inf  ;;  %v376_v4 = vsel %vm371_vm2, %v1671_v28, -inf  ;;  %v377_v11 = vsel %vm371_vm2, %v1672_v29, -inf  ;;  %v378_v40 = vsel %vm371_vm2, %v1673_v5, -inf  ;;  %v1680_v32 = vld [vmem:[%s1832_s17 + $0x2b] sm:$0x1] }
  0xe9   : > { %v379_v13 = vsel %vm371_vm2, %v1674_v63, -inf  ;;  %v388_v34 = vmax.f32 %v294_v61, %v372_v35  ;;  %v389_v47 = vmax.f32 %v295_v46, %v373_v25  ;;  %v390_v39 = vmax.f32 %v296_v62, %v374_v37  ;;  %v1681_v43 = vld [vmem:[%s1832_s17 + $0x33] sm:$0x1]  ;;  %v1682_v46 = vld [vmem:[%s1832_s17 + $0x3b] sm:$0x1] }
  0xea   : > { %v391_v42 = vmax.f32 %v297_v56, %v375_v8  ;;  %v392_v41 = vmax.f32 %v298_v54, %v376_v4  ;;  %v393_v59 = vmax.f32 %v299_v24, %v377_v11  ;;  %v394_v18 = vmax.f32 %v300_v26, %v378_v40  ;;  %v1683_v15 = vld [vmem:[%s1832_s17 + $0x4] sm:$0x1]  ;;  %v1684_v44 = vld [vmem:[%s1832_s17 + $0xc] sm:$0x1]  ;;  %v1685_v25 = vld [vmem:[%s1832_s17 + $0x14] sm:$0x1] }
  0xeb   : > { %v395_v2 = vmax.f32 %v301_v0, %v379_v13  ;;  %v466_v60 = vsel %vm465_vm3, %v1675_v14, -inf  ;;  %v467_v55 = vsel %vm465_vm3, %v1676_v19, -inf  ;;  %v468_v21 = vsel %vm465_vm3, %v1677_v20, -inf  ;;  %v1686_v37 = vld [vmem:[%s1832_s17 + $0x1c] sm:$0x1] }
  0xec   : > { %v469_v7 = vsel %vm465_vm3, %v1678_v51, -inf  ;;  %v470_v17 = vsel %vm465_vm3, %v1679_v36, -inf  ;;  %v471_v33 = vsel %vm465_vm3, %v1680_v32, -inf  ;;  %v472_v61 = vsel %vm465_vm3, %v1681_v43, -inf  ;;  %v1687_v8 = vld [vmem:[%s1832_s17 + $0x24] sm:$0x1] }
  0xed   : > { %v473_v52 = vsel %vm465_vm3, %v1682_v46, -inf  ;;  %v482_v62 = vmax.f32 %v388_v34, %v466_v60  ;;  %v483_v56 = vmax.f32 %v389_v47, %v467_v55  ;;  %v484_v54 = vmax.f32 %v390_v39, %v468_v21  ;;  %v1688_v4 = vld [vmem:[%s1832_s17 + $0x2c] sm:$0x1]  ;;  %v1689_v11 = vld [vmem:[%s1832_s17 + $0x34] sm:$0x1] }
  0xee   : > { %v485_v23 = vmax.f32 %v391_v42, %v469_v7  ;;  %v486_v24 = vmax.f32 %v392_v41, %v470_v17  ;;  %v487_v26 = vmax.f32 %v393_v59, %v471_v33  ;;  %v488_v0 = vmax.f32 %v394_v18, %v472_v61  ;;  %v1690_v40 = vld [vmem:[%s1832_s17 + $0x3c] sm:$0x1]  ;;  %v1692_v60 = vld [vmem:[%s1832_s17 + $0xd] sm:$0x1]  ;;  %v1693_v19 = vld [vmem:[%s1832_s17 + $0x15] sm:$0x1] }
  0xef   : > { %v489_v27 = vmax.f32 %v395_v2, %v473_v52  ;;  %v560_v35 = vsel %vm559_vm4, %v1683_v15, -inf  ;;  %v561_v53 = vsel %vm559_vm4, %v1684_v44, -inf  ;;  %v562_v58 = vsel %vm559_vm4, %v1685_v25, -inf  ;;  %v1691_v2 = vld [vmem:[%s1832_s17 + $0x5] sm:$0x1] }
  0xf0   : > { %v563_v57 = vsel %vm559_vm4, %v1686_v37, -inf  ;;  %v564_v28 = vsel %vm559_vm4, %v1687_v8, -inf  ;;  %v565_v29 = vsel %vm559_vm4, %v1688_v4, -inf  ;;  %v566_v5 = vsel %vm559_vm4, %v1689_v11, -inf  ;;  %v1694_v20 = vld [vmem:[%s1832_s17 + $0x1d] sm:$0x1] }
  0xf1   : > { %v567_v63 = vsel %vm559_vm4, %v1690_v40, -inf  ;;  %v576_v13 = vmax.f32 %v482_v62, %v560_v35  ;;  %v577_v34 = vmax.f32 %v483_v56, %v561_v53  ;;  %v578_v47 = vmax.f32 %v484_v54, %v562_v58  ;;  %v1695_v51 = vld [vmem:[%s1832_s17 + $0x25] sm:$0x1]  ;;  %v1696_v36 = vld [vmem:[%s1832_s17 + $0x2d] sm:$0x1] }
  0xf2   : > { %v579_v39 = vmax.f32 %v485_v23, %v563_v57  ;;  %v580_v42 = vmax.f32 %v486_v24, %v564_v28  ;;  %v581_v41 = vmax.f32 %v487_v26, %v565_v29  ;;  %v582_v59 = vmax.f32 %v488_v0, %v566_v5  ;;  %v1697_v32 = vld [vmem:[%s1832_s17 + $0x35] sm:$0x1]  ;;  %v1698_v43 = vld [vmem:[%s1832_s17 + $0x3d] sm:$0x1]  ;;  %v1699_v0 = vld [vmem:[%s1832_s17 + $0x6] sm:$0x1] }
  0xf3   : > { %v583_v18 = vmax.f32 %v489_v27, %v567_v63  ;;  %v654_v14 = vsel %vm653_vm5, %v1691_v2, -inf  ;;  %v655_v22 = vsel %vm653_vm5, %v1692_v60, -inf  ;;  %v656_v55 = vsel %vm653_vm5, %v1693_v19, -inf  ;;  %v1700_v15 = vld [vmem:[%s1832_s17 + $0xe] sm:$0x1] }
  0xf4   : > { %v657_v21 = vsel %vm653_vm5, %v1694_v20, -inf  ;;  %v658_v7 = vsel %vm653_vm5, %v1695_v51, -inf  ;;  %v659_v17 = vsel %vm653_vm5, %v1696_v36, -inf  ;;  %v660_v33 = vsel %vm653_vm5, %v1697_v32, -inf  ;;  %v1701_v35 = vld [vmem:[%s1832_s17 + $0x16] sm:$0x1] }
  0xf5   : > { %v661_v61 = vsel %vm653_vm5, %v1698_v43, -inf  ;;  %v670_v46 = vmax.f32 %v576_v13, %v654_v14  ;;  %v671_v52 = vmax.f32 %v577_v34, %v655_v22  ;;  %v672_v62 = vmax.f32 %v578_v47, %v656_v55  ;;  %v1702_v53 = vld [vmem:[%s1832_s17 + $0x1e] sm:$0x1]  ;;  %v1703_v58 = vld [vmem:[%s1832_s17 + $0x26] sm:$0x1] }
  0xf6   : > { %v673_v56 = vmax.f32 %v579_v39, %v657_v21  ;;  %v674_v54 = vmax.f32 %v580_v42, %v658_v7  ;;  %v675_v23 = vmax.f32 %v581_v41, %v659_v17  ;;  %v676_v24 = vmax.f32 %v582_v59, %v660_v33  ;;  %v1704_v57 = vld [vmem:[%s1832_s17 + $0x2e] sm:$0x1]  ;;  %v1705_v28 = vld [vmem:[%s1832_s17 + $0x36] sm:$0x1]  ;;  %v1706_v29 = vld [vmem:[%s1832_s17 + $0x3e] sm:$0x1] }
  0xf7   : > { %v677_v26 = vmax.f32 %v583_v18, %v661_v61  ;;  %v748_v27 = vsel %vm747_vm6, %v1699_v0, -inf  ;;  %v749_v48 = vsel %vm747_vm6, %v1700_v15, -inf  ;;  %v750_v44 = vsel %vm747_vm6, %v1701_v35, -inf  ;;  %v1707_v41 = vld [vmem:[%s1832_s17 + $0x7] sm:$0x1] }
  0xf8   : > { %v751_v25 = vsel %vm747_vm6, %v1702_v53, -inf  ;;  %v752_v37 = vsel %vm747_vm6, %v1703_v58, -inf  ;;  %v753_v8 = vsel %vm747_vm6, %v1704_v57, -inf  ;;  %v754_v4 = vsel %vm747_vm6, %v1705_v28, -inf  ;;  %v1708_v18 = vld [vmem:[%s1832_s17 + $0xf] sm:$0x1] }
  0xf9   : > { %v755_v11 = vsel %vm747_vm6, %v1706_v29, -inf  ;;  %v764_v5 = vmax.f32 %v670_v46, %v748_v27  ;;  %v765_v40 = vmax.f32 %v671_v52, %v749_v48  ;;  %v766_v63 = vmax.f32 %v672_v62, %v750_v44  ;;  %v1709_v2 = vld [vmem:[%s1832_s17 + $0x17] sm:$0x1]  ;;  %v1710_v60 = vld [vmem:[%s1832_s17 + $0x1f] sm:$0x1] }
  0xfa   : > { %v767_v13 = vmax.f32 %v673_v56, %v751_v25  ;;  %v768_v34 = vmax.f32 %v674_v54, %v752_v37  ;;  %v769_v47 = vmax.f32 %v675_v23, %v753_v8  ;;  %v770_v39 = vmax.f32 %v676_v24, %v754_v4  ;;  %v1711_v19 = vld [vmem:[%s1832_s17 + $0x27] sm:$0x1]  ;;  %v1712_v20 = vld [vmem:[%s1832_s17 + $0x2f] sm:$0x1]  ;;  %v1713_v51 = vld [vmem:[%s1832_s17 + $0x37] sm:$0x1] }
  0xfb   : > { %v771_v42 = vmax.f32 %v677_v26, %v755_v11  ;;  %v842_v59 = vsel %vm841_vm9, %v1707_v41, -inf  ;;  %v843_v30 = vsel %vm841_vm9, %v1708_v18, -inf  ;;  %v844_v14 = vsel %vm841_vm9, %v1709_v2, -inf  ;;  %v1714_v36 = vld [vmem:[%s1832_s17 + $0x3f] sm:$0x1]  ;;  %s1766_s17 = smov 4  }
  0xfc   : > { %v845_v22 = vsel %vm841_vm9, %v1710_v60, -inf  ;;  %v846_v55 = vsel %vm841_vm9, %v1711_v19, -inf  ;;  %v847_v21 = vsel %vm841_vm9, %v1712_v20, -inf  ;;  %v848_v7 = vsel %vm841_vm9, %v1713_v51, -inf  ;;  %v1629_v15 = vld [vmem:[%s2172_s9 + $0x1] ss:$0 sm:$0xff] }
  0xfd   : > { %v849_v17 = vsel %vm841_vm9, %v1714_v36, -inf  ;;  %v3373_v32 = vmax.f32 %v764_v5, %v842_v59  ;;  %v3375_v33 = vmax.f32 %v765_v40, %v843_v30  ;;  %v3377_v43 = vmax.f32 %v766_v63, %v844_v14 }
  0xfe   : > { %v3379_v61 = vmax.f32 %v767_v13, %v845_v22  ;;  %v3381_v46 = vmax.f32 %v768_v34, %v846_v55  ;;  %v3383_v52 = vmax.f32 %v769_v47, %v847_v21  ;;  %v3385_v62 = vmax.f32 %v770_v39, %v848_v7 }
  0xff   : > { %v3387_v56 = vmax.f32 %v771_v42, %v849_v17  ;;  %v918_v10 = vadd.f32 %v3140_v45, %v3373_v32  ;;  %v919_v54 = vadd.f32 %v3140_v45, %v3375_v33  ;;  %v920_v23 = vadd.f32 %v3140_v45, %v3377_v43 }
 0x100   : > { %v921_v24 = vadd.f32 %v3140_v45, %v3379_v61  ;;  %v922_v26 = vadd.f32 %v3140_v45, %v3381_v46  ;;  %v923_v0 = vadd.f32 %v3140_v45, %v3383_v52  ;;  %v924_v27 = vadd.f32 %v3140_v45, %v3385_v62 }
 0x101   : > { %v925_v48 = vadd.f32 %v3140_v45, %v3387_v56  ;;  %v950_v35 = vrot.slane %v919_v54, 7  ;;  %v953_v44 = vrot.slane %v920_v23, 6  ;;  %v1007_v53 = vadd.f32 %v1629_v15, %v3142_v38 }
 0x102   : > { %v956_v25 = vrot.slane %v921_v24, 5  ;;  %v959_v58 = vrot.slane %v922_v26, 4  ;;  %v962_v37 = vrot.slane %v923_v0, 3  ;;  %v965_v57 = vrot.slane %v924_v27, 2 }
 0x103   : > { %v952_v8 = vsel %vm951_vm7, %v950_v35, %v918_v10  ;;  %v968_v28 = vrot.slane %v925_v48, 1  ;;  %v1008_v4 = vadd.f32 %v1629_v15, %v3144_v50  ;;  %v1009_v29 = vadd.f32 %v1629_v15, %v3146_v3 }
 0x104   : > { %v955_v11 = vsel %vm954_vm8, %v953_v44, %v952_v8  ;;  %v1010_v5 = vadd.f32 %v1629_v15, %v3148_v6  ;;  %v1011_v45 = vadd.f32 %v1629_v15, %v3150_v12  ;;  %v1012_v40 = vadd.f32 %v1629_v15, %v3152_v9 }
 0x105   : > { %v958_v63 = vsel %vm957_vm10, %v956_v25, %v955_v11  ;;  %v1013_v13 = vadd.f32 %v1629_v15, %v3154_v31  ;;  %v1014_v34 = vadd.f32 %v1629_v15, %v3156_v16  ;;  %v1045_v47 = vrot.slane %v1008_v4, 7 }
 0x106   : > { %v961_v39 = vsel %vm960_vm11, %v959_v58, %v958_v63  ;;  %v1047_v42 = vrot.slane %v1009_v29, 6  ;;  %v1049_v41 = vrot.slane %v1010_v5, 5  ;;  %v1051_v59 = vrot.slane %v1011_v45, 4 }
 0x107   : > { %v964_v18 = vsel %vm963_vm12, %v962_v37, %v961_v39  ;;  %v1046_v30 = vsel %vm951_vm7, %v1045_v47, %v1007_v53  ;;  %v1053_v2 = vrot.slane %v1012_v40, 3  ;;  %v1055_v14 = vrot.slane %v1013_v13, 2 }
 0x108   : > { %v967_v60 = vsel %vm966_vm13, %v965_v57, %v964_v18  ;;  %v1048_v22 = vsel %vm954_vm8, %v1047_v42, %v1046_v30  ;;  %v1057_v19 = vrot.slane %v1014_v34, 1  ;;  %v999_v55 = vadd.f32 %v1629_v15, %v3373_v32 }
 0x109   : > { %v970_v20 = vsel %vm969_vm14, %v968_v28, %v967_v60  ;;  %v1050_v21 = vsel %vm957_vm10, %v1049_v41, %v1048_v22  ;;  %v1000_v51 = vadd.f32 %v1629_v15, %v3375_v33  ;;  %v1001_v7 = vadd.f32 %v1629_v15, %v3377_v43 }
 0x10a   : > { %v988_v36 = vsel %vm987_vm15, %v970_v20, -inf  ;;  %v1052_v17 = vsel %vm960_vm11, %v1051_v59, %v1050_v21  ;;  %v1002_v10 = vadd.f32 %v1629_v15, %v3379_v61  ;;  %v1003_v54 = vadd.f32 %v1629_v15, %v3381_v46  ;;  %v1715_v20 = vld [vmem:[%s2172_s9 + $0x2] ss:$0 sm:$0xff] }
 0x10b   : > { %989 = vmax.xlane.f32.xlu0 %v988_v36  ;;  %v1054_v23 = vsel %vm963_vm12, %v1053_v2, %v1052_v17  ;;  %v1004_v24 = vadd.f32 %v1629_v15, %v3383_v52  ;;  %v1005_v26 = vadd.f32 %v1629_v15, %v3385_v62  ;;  %v1006_v0 = vadd.f32 %v1629_v15, %v3387_v56 }
 0x10c   : > { %v1056_v27 = vsel %vm966_vm13, %v1055_v14, %v1054_v23  ;;  %v1031_v48 = vrot.slane %v1000_v51, 7  ;;  %v1033_v35 = vrot.slane %v1001_v7, 6  ;;  %v1035_v44 = vrot.slane %v1002_v10, 5 }
 0x10d   : > { %v1058_v53 = vsel %vm969_vm14, %v1057_v19, %v1056_v27  ;;  %v1037_v25 = vrot.slane %v1003_v54, 4  ;;  %v1039_v58 = vrot.slane %v1004_v24, 3  ;;  %v1041_v37 = vrot.slane %v1005_v26, 2 }
 0x10e   : > { %v1064_v57 = vsel %vm987_vm15, %v1058_v53, -inf  ;;  %v1032_v8 = vsel %vm951_vm7, %v1031_v48, %v999_v55  ;;  %v1043_v28 = vrot.slane %v1006_v0, 1  ;;  %v1080_v4 = vadd.f32 %v2685_v1, %v3142_v38 }
 0x10f   : > { %1065 = vmax.xlane.f32.xlu1 %v1064_v57  ;;  %v1034_v15 = vsel %vm954_vm8, %v1033_v35, %v1032_v8  ;;  %v1081_v29 = vadd.f32 %v2685_v1, %v3144_v50  ;;  %v1082_v11 = vadd.f32 %v2685_v1, %v3146_v3  ;;  %v1083_v5 = vadd.f32 %v2685_v1, %v3148_v6 }
 0x110   : > { %v1036_v45 = vsel %vm957_vm10, %v1035_v44, %v1034_v15  ;;  %v1084_v40 = vadd.f32 %v2685_v1, %v3150_v12  ;;  %v1085_v63 = vadd.f32 %v2685_v1, %v3152_v9  ;;  %v1086_v13 = vadd.f32 %v2685_v1, %v3154_v31 }
 0x111   : > { %v1038_v34 = vsel %vm960_vm11, %v1037_v25, %v1036_v45  ;;  %v1087_v47 = vadd.f32 %v2685_v1, %v3156_v16  ;;  %v1118_v39 = vrot.slane %v1081_v29, 7  ;;  %v1120_v42 = vrot.slane %v1082_v11, 6 }
 0x112   : > { %v1040_v41 = vsel %vm963_vm12, %v1039_v58, %v1038_v34  ;;  %v1122_v59 = vrot.slane %v1083_v5, 5  ;;  %v1124_v18 = vrot.slane %v1084_v40, 4  ;;  %v1126_v30 = vrot.slane %v1085_v63, 3 }
 0x113   : > { %v1042_v2 = vsel %vm966_vm13, %v1041_v37, %v1040_v41  ;;  %v1119_v14 = vsel %vm951_vm7, %v1118_v39, %v1080_v4  ;;  %v1128_v60 = vrot.slane %v1086_v13, 2  ;;  %v1130_v22 = vrot.slane %v1087_v47, 1 }
 0x114   : > { %v1044_v19 = vsel %vm969_vm14, %v1043_v28, %v1042_v2  ;;  %v1121_v55 = vsel %vm954_vm8, %v1120_v42, %v1119_v14  ;;  %v1072_v1 = vadd.f32 %v1715_v20, %v3373_v32  ;;  %v1073_v21 = vadd.f32 %v1715_v20, %v3375_v33 }
 0x115   : > { %v1061_v51 = vsel %vm987_vm15, %v1044_v19, -inf  ;;  %v1123_v7 = vsel %vm957_vm10, %v1122_v59, %v1121_v55  ;;  %v1074_v36 = vadd.f32 %v1715_v20, %v3377_v43  ;;  %v1075_v17 = vadd.f32 %v1715_v20, %v3379_v61 }
 0x116   : > { %1062 = vmax.xlane.f32.xlu0 %v1061_v51  ;;  %v1125_v10 = vsel %vm960_vm11, %v1124_v18, %v1123_v7  ;;  %v1076_v54 = vadd.f32 %v1715_v20, %v3381_v46  ;;  %v1077_v23 = vadd.f32 %v1715_v20, %v3383_v52  ;;  %v1078_v24 = vadd.f32 %v1715_v20, %v3385_v62 }
 0x117   : > { %v1127_v26 = vsel %vm963_vm12, %v1126_v30, %v1125_v10  ;;  %v1079_v0 = vadd.f32 %v1715_v20, %v3387_v56  ;;  %v1104_v27 = vrot.slane %v1073_v21, 7  ;;  %v1106_v48 = vrot.slane %v1074_v36, 6  ;;  %v1716_v30 = vld [vmem:[%s2172_s9 + $0x3] ss:$0 sm:$0xff] }
 0x118   : > { %v1129_v35 = vsel %vm966_vm13, %v1128_v60, %v1127_v26  ;;  %v1108_v44 = vrot.slane %v1075_v17, 5  ;;  %v1110_v53 = vrot.slane %v1076_v54, 4  ;;  %v1112_v25 = vrot.slane %v1077_v23, 3 }
 0x119   : > { %v1131_v58 = vsel %vm969_vm14, %v1130_v22, %v1129_v35  ;;  %v1105_v37 = vsel %vm951_vm7, %v1104_v27, %v1072_v1  ;;  %v1114_v57 = vrot.slane %v1078_v24, 2  ;;  %v1116_v8 = vrot.slane %v1079_v0, 1  ;;  %v1294_v35 = vpop.xlane.xlu0 %1293 }
 0x11a   : > { %v1137_v28 = vsel %vm987_vm15, %v1131_v58, -inf  ;;  %v1107_v4 = vsel %vm954_vm8, %v1106_v48, %v1105_v37  ;;  %v1153_v15 = vadd.f32 %v2746_v49, %v3142_v38  ;;  %v1154_v29 = vadd.f32 %v2746_v49, %v3144_v50  ;;  %v1367_v48 = vpop.xlane.xlu1 %1366 }
 0x11b   : > { %1138 = vmax.xlane.f32.xlu1 %v1137_v28  ;;  %v1109_v11 = vsel %vm957_vm10, %v1108_v44, %v1107_v4  ;;  %v1155_v5 = vadd.f32 %v2746_v49, %v3146_v3  ;;  %v1156_v45 = vadd.f32 %v2746_v49, %v3148_v6  ;;  %v1157_v40 = vadd.f32 %v2746_v49, %v3150_v12 }
 0x11c   : > { %v1111_v63 = vsel %vm960_vm11, %v1110_v53, %v1109_v11  ;;  %v1158_v38 = vadd.f32 %v2746_v49, %v3152_v9  ;;  %v1159_v50 = vadd.f32 %v2746_v49, %v3154_v31  ;;  %v1160_v13 = vadd.f32 %v2746_v49, %v3156_v16 }
 0x11d   : > { %v1113_v3 = vsel %vm963_vm12, %v1112_v25, %v1111_v63  ;;  %v1191_v34 = vrot.slane %v1154_v29, 7  ;;  %v1193_v47 = vrot.slane %v1155_v5, 6  ;;  %v1195_v6 = vrot.slane %v1156_v45, 5 }
 0x11e   : > { %v1115_v39 = vsel %vm966_vm13, %v1114_v57, %v1113_v3  ;;  %v1197_v12 = vrot.slane %v1157_v40, 4  ;;  %v1199_v42 = vrot.slane %v1158_v38, 3  ;;  %v1201_v41 = vrot.slane %v1159_v50, 2 }
 0x11f   : > { %v1117_v59 = vsel %vm969_vm14, %v1116_v8, %v1115_v39  ;;  %v1192_v9 = vsel %vm951_vm7, %v1191_v34, %v1153_v15  ;;  %v1203_v18 = vrot.slane %v1160_v13, 1  ;;  %v1145_v31 = vadd.f32 %v1716_v30, %v3373_v32 }
 0x120   : > { %v1134_v49 = vsel %vm987_vm15, %v1117_v59, -inf  ;;  %v1194_v16 = vsel %vm954_vm8, %v1193_v47, %v1192_v9  ;;  %v1146_v2 = vadd.f32 %v1716_v30, %v3375_v33  ;;  %v1147_v14 = vadd.f32 %v1716_v30, %v3377_v43 }
 0x121   : > { %1135 = vmax.xlane.f32.xlu0 %v1134_v49  ;;  %v1196_v60 = vsel %vm957_vm10, %v1195_v6, %v1194_v16  ;;  %v1148_v22 = vadd.f32 %v1716_v30, %v3379_v61  ;;  %v1149_v19 = vadd.f32 %v1716_v30, %v3381_v46  ;;  %v1150_v55 = vadd.f32 %v1716_v30, %v3383_v52 }
 0x122   : > { %v1198_v20 = vsel %vm960_vm11, %v1197_v12, %v1196_v60  ;;  %v1151_v32 = vadd.f32 %v1716_v30, %v3385_v62  ;;  %v1152_v1 = vadd.f32 %v1716_v30, %v3387_v56  ;;  %v1177_v21 = vrot.slane %v1146_v2, 7 }
 0x123   : > { %v1200_v33 = vsel %vm963_vm12, %v1199_v42, %v1198_v20  ;;  %v1179_v51 = vrot.slane %v1147_v14, 6  ;;  %v1181_v43 = vrot.slane %v1148_v22, 5  ;;  %v1183_v7 = vrot.slane %v1149_v19, 4 }
 0x124   : > { %v1202_v36 = vsel %vm966_vm13, %v1201_v41, %v1200_v33  ;;  %v1178_v61 = vsel %vm951_vm7, %v1177_v21, %v1145_v31  ;;  %v1185_v17 = vrot.slane %v1150_v55, 3  ;;  %v1187_v10 = vrot.slane %v1151_v32, 2 }
 0x125   : > { %v1204_v46 = vsel %vm969_vm14, %v1203_v18, %v1202_v36  ;;  %v1180_v52 = vsel %vm954_vm8, %v1179_v51, %v1178_v61  ;;  %v1189_v54 = vrot.slane %v1152_v1, 1  ;;  %vm1216_vm7 = vcmask 15360  }
 0x126   : > { %v1210_v62 = vsel %vm987_vm15, %v1204_v46, -inf  ;;  %v1182_v56 = vsel %vm957_vm10, %v1181_v43, %v1180_v52  ;;  %vm1213_vm8 = vcmask 7168   ;;  %vm1219_vm10 = vcmask 23552  }
 0x127   : > { %1211 = vmax.xlane.f32.xlu1 %v1210_v62  ;;  %v1184_v23 = vsel %vm960_vm11, %v1183_v7, %v1182_v56  ;;  %v1517_v4 = vsel %vm1213_vm8, %v1294_v35, %v1367_v48  ;;  %vm1222_vm11 = vcmask 31744  }
 0x128   : > { %v1186_v24 = vsel %vm963_vm12, %v1185_v17, %v1184_v23  ;;  %vm1531_vm12 = vcmask 64544  }
 0x129   : > { %v1188_v26 = vsel %vm966_vm13, %v1187_v10, %v1186_v24 }
 0x12a   : > { %v1190_v0 = vsel %vm969_vm14, %v1189_v54, %v1188_v26 }
 0x12b   : > { %v1207_v27 = vsel %vm987_vm15, %v1190_v0, -inf }
 0x12c   : > { %1208 = vmax.xlane.f32.xlu0 %v1207_v27 }
 0x130   : > { %v1370_v44 = vpop.xlane.xlu1 %1369 }
 0x134   : > { %v1297_v53 = vpop.xlane.xlu0 %1296 }
 0x135   : > { %v1518_v58 = vsel %vm1213_vm8, %v1297_v53, %v1370_v44 }
 0x13a   : > { %v1443_v25 = vpop.xlane.xlu1 %1442 }
 0x13b   : > { %v1520_v57 = vsel %vm1216_vm7, %v1518_v58, %v1443_v25 }
 0x140   : > { %v1440_v37 = vpop.xlane.xlu0 %1439 }
 0x141   : > { %v1519_v15 = vsel %vm1216_vm7, %v1517_v4, %v1440_v37 }
 0x146   : > { %v1516_v8 = vpop.xlane.xlu1 %1515 }
 0x147   : > { %v1522_v28 = vsel %vm1219_vm10, %v1520_v57, %v1516_v8 }
 0x148   : > { %1527 = vrot.lane.b32.xlu1 %v1522_v28, %s1766_s17 }
 0x14b   : > { %v1513_v29 = vpop.xlane.xlu0 %1512 }
 0x14c   : > { %v1521_v11 = vsel %vm1219_vm10, %v1519_v15, %v1513_v29 }
 0x14d   : > { %1525 = vrot.lane.b32.xlu0 %v1521_v11, %s1766_s17 }
 0x175   : > { %v993_v5 = vpop.xlane.xlu1 %992 }
 0x198   : > { %v990_v45 = vpop.xlane.xlu0 %989 }
 0x19c   : > { %v1066_v40 = vpop.xlane.xlu1 %1065 }
 0x19d   : > { %v1215_v50 = vsel %vm1213_vm8, %v993_v5, %v1066_v40 }
 0x1a3   : > { %v1063_v63 = vpop.xlane.xlu0 %1062 }
 0x1a4   : > { %v1214_v34 = vsel %vm1213_vm8, %v990_v45, %v1063_v63 }
 0x1a8   : > { %v1139_v38 = vpop.xlane.xlu1 %1138 }
 0x1a9   : > { %v1218_v13 = vsel %vm1216_vm7, %v1215_v50, %v1139_v38 }
 0x1ae   : > { %v1136_v3 = vpop.xlane.xlu0 %1135 }
 0x1af   : > { %v1217_v39 = vsel %vm1216_vm7, %v1214_v34, %v1136_v3 }
 0x1b4   : > { %v1212_v47 = vpop.xlane.xlu1 %1211 }
 0x1b5   : > { %v1221_v6 = vsel %vm1219_vm10, %v1218_v13, %v1212_v47 }
 0x1b6   : > { %1224 = vst.msk [vmem:[%s186_s29 + $0x8] sm:$0xff] %vm1222_vm11, %v1221_v6 }
 0x1b9   : > { %v1209_v12 = vpop.xlane.xlu0 %1208 }
 0x1ba   : > { %v1220_v42 = vsel %vm1219_vm10, %v1217_v39, %v1209_v12  ;;  %v1528_v41 = vpop.permute.xlu1 %1527 }
 0x1bb   : > { %1223 = vst.msk [vmem:[%s186_s29] sm:$0xff] %vm1222_vm11, %v1220_v42 }
 0x1bc   : > { %1533 = vst.msk [vmem:[%s186_s29 + $0x8] sm:$0xff] %vm1531_vm12, %v1528_v41 }
 0x1bf   : > { %v1526_v59 = vpop.permute.xlu0 %1525 }
 0x1c0   : > { %1532 = vst.msk [vmem:[%s186_s29] sm:$0xff] %vm1531_vm12, %v1526_v59 }
 0x1c1 PF: > { %s29_s6 = sadd.s32 1, %s1761_s6  }
 0x1c2   : > { %p26_p12 = scmp.ge.s32.totalorder %s29_s6, 6  }
 0x1c4   :  { %28 = sbr.rel (!%p26_p12) target bundleno = 36 (0x24), region = 61 }

</bundles_post_ra>
